<compile_context>
chip_gen: v7x
topology: tpu7x:2x2x1
jax: 0.10.0
libtpu: 0.0.40
codegen_flags: <defaults>
</compile_context>

<pallas_src>
import numpy as np
import jax
import jax.numpy as jnp
from jax.experimental import pallas as pl
from jax.experimental.pallas import tpu as pltpu

INPUT_CHANNEL = 12
OUT_CHANNELS = (16, 32, 64, 128, 32)   # (16, 32, 64, 128) + output_dim=32
KERNEL_SIZE = 2
STRIDE = 2
NEG_SLOPE = 0.1                        # LeakyReLU(0.1)
OUT_LANES = 128                        # lane-dense padded channel count (weights / output)
PAD_ROWS = 8                           # 8-row-aligned causal zero pad in the tap scratches


def _encoder_kernel(x_ref, w_ref, b_ref, out_ref, act0_ref, act_ref):
    """
    x_ref   : (BB, L, C0)              input batch block (time on sublanes, chans on lanes)
    w_ref   : (2*n_layers, 128, 128)   bf16 weight slab; tile 2l = prev tap W[:,:,0].T,
                                       tile 2l+1 = cur tap W[:,:,1].T (zero padded)
    b_ref   : (n_layers, 128)          f32 bias slab (lanes >= C_out are zero)
    out_ref : (BB*T_f, 128)            lane-dense output slab
    act0_ref: (BB*L + 8, C0)           f32 tap scratch for layer 0 (rows 0..7 causal zeros)
    act_ref : (BB*L//2 + 8, 128)       f32 tap scratch for layers >= 1
    """
    bb, seq, c0 = x_ref.shape
    n_layers = w_ref.shape[0] // 2
    lanes = w_ref.shape[-1]
    m0 = bb * seq

    # Causal zero-pad rows, written once per grid step (aligned full-lane stores).
    act0_ref[0:PAD_ROWS, :] = jnp.zeros((PAD_ROWS, c0), jnp.float32)
    act_ref[0:PAD_ROWS, :] = jnp.zeros((PAD_ROWS, lanes), jnp.float32)

    def taps(ref, m_in, t_out):
        # Activations live at rows [8, 8 + m_in); row 7 is a causal zero.
        #   prev[q] = h[2q-1]  (strided read starting at row 7)
        #   cur[q]  = h[2q]    (strided read starting at row 8)
        # Flat (batch*time) layout => q = b*t_out + t, so the causal tap at the start of
        # every batch item (t == 0) must be forced to zero or item b would read item b-1's
        # last timestep.  t_out is a power of two.
        m_out = m_in // 2
        prev = ref[pl.ds(PAD_ROWS - 1, m_out, stride=2), :]
        cur = ref[pl.ds(PAD_ROWS, m_out, stride=2), :]
        q = jax.lax.broadcasted_iota(jnp.int32, (m_out, 1), 0)
        prev = jnp.where((q & (t_out - 1)) == 0, 0.0, prev)
        return prev, cur

    def conv_act(prev, cur, layer, k_rows):
        # Two MXU matmuls (bf16 operands, f32 accumulation); bias + LeakyReLU in f32.
        w0 = w_ref[2 * layer][:k_rows, :]
        w1 = w_ref[2 * layer + 1][:k_rows, :]
        z = jnp.dot(prev.astype(jnp.bfloat16), w0, preferred_element_type=jnp.float32)
        z = z + jnp.dot(cur.astype(jnp.bfloat16), w1, preferred_element_type=jnp.float32)
        z = z + b_ref[layer:layer + 1, :]
        return jnp.where(z >= 0, z, NEG_SLOPE * z)

    # ---- layer 0: taps come from the narrow (C0-lane) input scratch ----
    act0_ref[pl.ds(PAD_ROWS, m0), :] = x_ref[...].reshape(m0, c0)   # aligned store
    t_out = seq // 2
    prev, cur = taps(act0_ref, m0, t_out)
    h = conv_act(prev, cur, 0, c0)                                  # (m0//2, 128) f32
    m_in = m0 // 2

    # ---- layers 1..n-1: uniform 128-lane path ----
    for layer in range(1, n_layers):
        act_ref[pl.ds(PAD_ROWS, m_in), :] = h                       # aligned full-lane store
        t_out //= 2
        prev, cur = taps(act_ref, m_in, t_out)
        h = conv_act(prev, cur, layer, lanes)
        m_in //= 2

    out_ref[...] = h.astype(out_ref.dtype)                          # lane-dense HBM writeback


def init_params(key):
    """Deterministic synthetic Conv1d params (PyTorch default-style uniform init)."""
    params = []
    c_in = INPUT_CHANNEL
    for c_out in OUT_CHANNELS:
        key, kw, kb = jax.random.split(key, 3)
        bound = 1.0 / np.sqrt(c_in * KERNEL_SIZE)
        w = jax.random.uniform(kw, (c_out, c_in, KERNEL_SIZE), jnp.float32, -bound, bound)
        b = jax.random.uniform(kb, (c_out,), jnp.float32, -bound, bound)
        params.append((w, b))
        c_in = c_out
    return params


def _pack_params(params):
    """Pack per-layer Conv1d (W, b) into two VMEM-resident slabs (weights bf16, bias f32)."""
    n_layers = len(params)
    w_slab = jnp.zeros((2 * n_layers, OUT_LANES, OUT_LANES), jnp.float32)
    b_slab = jnp.zeros((n_layers, OUT_LANES), jnp.float32)
    for l, (w, b) in enumerate(params):
        c_out, c_in, _ = w.shape
        w_slab = w_slab.at[2 * l, :c_in, :c_out].set(w[:, :, 0].T)      # prev tap
        w_slab = w_slab.at[2 * l + 1, :c_in, :c_out].set(w[:, :, 1].T)  # cur tap
        b_slab = b_slab.at[l, :c_out].set(b)
    return w_slab.astype(jnp.bfloat16), b_slab


def causal_conv_ft_encoder(x_ncl, params, *, batch_block=None):
    """x_ncl: (B, 12, L) f32, L divisible by 2**n_layers. Returns (B, 32, L // 2**n_layers)."""
    B, C, L = x_ncl.shape
    n_layers = len(params)
    c_final = params[-1][0].shape[0]
    assert C == INPUT_CHANNEL
    # TODO(synk): PyTorch floor semantics for L not divisible by 2**n_layers are not
    # implemented; the fused kernel targets the stated FT-history workload (L % 32 == 0).
    assert L % (STRIDE ** n_layers) == 0, "L must be divisible by stride ** n_layers"
    t_f = L // (STRIDE ** n_layers)

    # Batch block: fold as many items as VMEM allows into the matmul M dimension.
    # Production guidance: >=128 on v5e/v6e, cap ~256 on v7x (64 MiB VMEM); keep the grid
    # multi-step so both v7x TensorCores get work.
    if batch_block is None:
        batch_block = min(B, 128)
        while B % batch_block:
            batch_block -= 1
    assert B % batch_block == 0, "batch must be divisible by batch_block"
    if (batch_block * t_f) % 8 != 0 and batch_block != B:
        batch_block = B            # keep the output block (8, 128)-legal

    # glue: NCL -> (B, L, C)  (time on sublanes, channels on lanes).
    x_blc = jnp.transpose(x_ncl, (0, 2, 1)).astype(jnp.float32)
    w_slab, b_slab = _pack_params(params)

    m0 = batch_block * L
    # Rough per-step VMEM footprint -> explicit scoped-VMEM request (capped at 64 MiB;
    # re-derive batch_block per generation, especially v7x).
    est = (w_slab.size * 2 + b_slab.size * 4
           + 2 * batch_block * L * C * 4          # double-buffered input blocks
           + 2 * batch_block * t_f * OUT_LANES * 4
           + (m0 + PAD_ROWS) * C * 4              # layer-0 tap scratch
           + (m0 // 2 + PAD_ROWS) * OUT_LANES * 4 # layers >= 1 tap scratch
           + 4 * (m0 // 2) * OUT_LANES * 4)       # headroom for compiler-managed values
    vmem_limit = int(min(64 * 2**20, max(32 * 2**20, 1.5 * est)))

    out_slab = pl.pallas_call(
        _encoder_kernel,
        grid=(B // batch_block,),
        out_shape=jax.ShapeDtypeStruct((B * t_f, OUT_LANES), jnp.float32),
        in_specs=[
            pl.BlockSpec((batch_block, L, C), lambda g: (g, 0, 0)),
            pl.BlockSpec(w_slab.shape, lambda g: (0, 0, 0)),   # VMEM-resident across grid
            pl.BlockSpec(b_slab.shape, lambda g: (0, 0)),      # VMEM-resident across grid
        ],
        out_specs=pl.BlockSpec((batch_block * t_f, OUT_LANES), lambda g: (g, 0)),
        scratch_shapes=[
            pltpu.VMEM((m0 + PAD_ROWS, C), jnp.float32),               # layer-0 taps
            pltpu.VMEM((m0 // 2 + PAD_ROWS, OUT_LANES), jnp.float32),  # layers >= 1 taps
        ],
        compiler_params=pltpu.CompilerParams(
            dimension_semantics=("parallel",),
            vmem_limit_bytes=vmem_limit),
    )(x_blc, w_slab, b_slab)

    # glue: (B*T_f, 128) -> (B, T_f, 128) -> real channels -> PyTorch NCL (B, C_out, T_f).
    out = out_slab.reshape(B, t_f, OUT_LANES)[:, :, :c_final]
    return jnp.transpose(out, (0, 2, 1))


def ref_forward(x_ncl, params):
    """Pure-JAX reference (lax.conv at highest precision) for validation."""
    h = x_ncl.astype(jnp.float32)
    pad = KERNEL_SIZE - 1
    for (w, b) in params:
        y = jax.lax.conv_general_dilated(
            h, w, window_strides=(STRIDE,), padding=[(pad, pad)],
            dimension_numbers=("NCH", "OIH", "NCH"),
            precision=jax.lax.Precision.HIGHEST)
        y = y + b[None, :, None]
        y = y[:, :, : y.shape[-1] - pad]     # causal chop
        h = jnp.where(y >= 0, y, NEG_SLOPE * y)
    return h


if __name__ == "__main__":
    key = jax.random.PRNGKey(0)
    key, kx = jax.random.split(key)

    B, L = 16, 32                                           # small FT-history sequence
    x = jax.random.normal(kx, (B, INPUT_CHANNEL, L), jnp.float32)   # PyTorch NCL input
    params = init_params(key)

    # batch_block=8 -> grid of 2 steps (keeps both v7x TensorCores busy even at this size).
    out = jax.block_until_ready(causal_conv_ft_encoder(x, params, batch_block=8))

    ref = ref_forward(x, params)
    n_layers = len(OUT_CHANNELS)
    assert out.shape == ref.shape == (B, OUT_CHANNELS[-1], L // (STRIDE ** n_layers))
    # Explicit bf16 MXU operands with f32 accumulation vs f32 HIGHEST reference.
    np.testing.assert_allclose(np.asarray(out), np.asarray(ref), rtol=2e-2, atol=2e-2)
    print("KERNEL_OK")
</pallas_src>

<mosaic_0001>
module attributes {stable_mosaic.version = 11 : i64} {
  func.func @_encoder_kernel(%arg0: i32, %arg1: memref<8x32x12xf32, #tpu.memory_space<vmem>>, %arg2: memref<10x128x128xbf16, #tpu.memory_space<vmem>>, %arg3: memref<5x128xf32, #tpu.memory_space<vmem>>, %arg4: memref<8x128xf32, #tpu.memory_space<vmem>>, %arg5: memref<264x12xf32, #tpu.memory_space<vmem>>, %arg6: memref<136x128xf32, #tpu.memory_space<vmem>>) attributes {dimension_semantics = [#tpu.dimension_semantics<parallel>], iteration_bounds = array<i64: 2>, scalar_prefetch = 0 : i64, scratch_operands = 2 : i64, tpu.core_type = #tpu.core_type<tc>, window_params = [{transform_indices = @transform_0, window_bounds = array<i64: 8, 32, 12>}, {pipeline_mode = #tpu.pipeline_mode<synchronous>, transform_indices = @transform_1, window_bounds = array<i64: 10, 128, 128>}, {pipeline_mode = #tpu.pipeline_mode<synchronous>, transform_indices = @transform_2, window_bounds = array<i64: 5, 128>}, {transform_indices = @transform_3, window_bounds = array<i64: 8, 128>}]} {
    %cst = arith.constant 0.000000e+00 : f32
    %0 = vector.broadcast %cst : f32 to vector<8x12xf32>
    %c0 = arith.constant 0 : index
    %c0_0 = arith.constant 0 : index
    %1 = vector.load %arg5[%c0, %c0_0] : memref<264x12xf32, #tpu.memory_space<vmem>>, vector<8x12xf32>
    tpu.vector_store %arg5[%c0, %c0_0], %0 {strides = array<i32>} : memref<264x12xf32, #tpu.memory_space<vmem>>, vector<8x12xf32>,
    %cst_1 = arith.constant 0.000000e+00 : f32
    %2 = vector.broadcast %cst_1 : f32 to vector<8x128xf32>
    %c0_2 = arith.constant 0 : index
    %c0_3 = arith.constant 0 : index
    %3 = vector.load %arg6[%c0_2, %c0_3] : memref<136x128xf32, #tpu.memory_space<vmem>>, vector<8x128xf32>
    tpu.vector_store %arg6[%c0_2, %c0_3], %2 {strides = array<i32>} : memref<136x128xf32, #tpu.memory_space<vmem>>, vector<8x128xf32>,
    %c0_4 = arith.constant 0 : index
    %c0_5 = arith.constant 0 : index
    %c0_6 = arith.constant 0 : index
    %4 = vector.load %arg1[%c0_4, %c0_5, %c0_6] : memref<8x32x12xf32, #tpu.memory_space<vmem>>, vector<8x32x12xf32>
    %5 = vector.shape_cast %4 : vector<8x32x12xf32> to vector<256x12xf32>
    %c8 = arith.constant 8 : index
    %c0_7 = arith.constant 0 : index
    %6 = vector.load %arg5[%c8, %c0_7] : memref<264x12xf32, #tpu.memory_space<vmem>>, vector<256x12xf32>
    tpu.vector_store %arg5[%c8, %c0_7], %5 {strides = array<i32>} : memref<264x12xf32, #tpu.memory_space<vmem>>, vector<256x12xf32>,
    %c7 = arith.constant 7 : index
    %c0_8 = arith.constant 0 : index
    %7 = tpu.strided_load %arg5[%c7, %c0_8] {strides = array<i32: 2, 1>} : memref<264x12xf32, #tpu.memory_space<vmem>>, vector<128x12xf32>
    %c8_9 = arith.constant 8 : index
    %c0_10 = arith.constant 0 : index
    %8 = tpu.strided_load %arg5[%c8_9, %c0_10] {strides = array<i32: 2, 1>} : memref<264x12xf32, #tpu.memory_space<vmem>>, vector<128x12xf32>
    %9 = tpu.iota {dimensions = array<i32: 0>} : vector<128x1xi32>
    %c15_i32 = arith.constant 15 : i32
    %10 = vector.broadcast %c15_i32 : i32 to vector<128x1xi32>
    %11 = arith.andi %9, %10 : vector<128x1xi32>
    %c0_i32 = arith.constant 0 : i32
    %12 = vector.broadcast %c0_i32 : i32 to vector<128x1xi32>
    %13 = arith.cmpi eq, %11, %12 : vector<128x1xi32>
    %cst_11 = arith.constant 0.000000e+00 : f32
    %14 = vector.shape_cast %13 : vector<128x1xi1> to vector<128x1xi1>
    %15 = vector.broadcast %14 : vector<128x1xi1> to vector<128x12xi1>
    %16 = vector.broadcast %cst_11 : f32 to vector<128x12xf32>
    %17 = arith.select %15, %16, %7 : vector<128x12xi1>, vector<128x12xf32>
    %c0_12 = arith.constant 0 : index
    %c0_13 = arith.constant 0 : index
    %c0_14 = arith.constant 0 : index
    %18 = vector.load %arg2[%c0_12, %c0_13, %c0_14] : memref<10x128x128xbf16, #tpu.memory_space<vmem>>, vector<1x128x128xbf16>
    %19 = vector.shape_cast %18 : vector<1x128x128xbf16> to vector<128x128xbf16>
    %20 = vector.extract_strided_slice %19 {offsets = [0, 0], sizes = [12, 128], strides = [1, 1]} : vector<128x128xbf16> to vector<12x128xbf16>
    %c1 = arith.constant 1 : index
    %c0_15 = arith.constant 0 : index
    %c0_16 = arith.constant 0 : index
    %21 = vector.load %arg2[%c1, %c0_15, %c0_16] : memref<10x128x128xbf16, #tpu.memory_space<vmem>>, vector<1x128x128xbf16>
    %22 = vector.shape_cast %21 : vector<1x128x128xbf16> to vector<128x128xbf16>
    %23 = vector.extract_strided_slice %22 {offsets = [0, 0], sizes = [12, 128], strides = [1, 1]} : vector<128x128xbf16> to vector<12x128xbf16>
    %24 = arith.truncf %17 : vector<128x12xf32> to vector<128x12xbf16>
    %cst_17 = arith.constant dense<0.000000e+00> : vector<128x128xf32>
    %25 = tpu.matmul %24, %20, %cst_17 {dimension_numbers = #tpu.dot_dimension_numbers<[1], [0], [0], [1], [0, 0, 1, 1], [], []>} : vector<128x12xbf16>, vector<12x128xbf16>, vector<128x128xf32> -> vector<128x128xf32>
    %26 = arith.truncf %8 : vector<128x12xf32> to vector<128x12xbf16>
    %cst_18 = arith.constant dense<0.000000e+00> : vector<128x128xf32>
    %27 = tpu.matmul %26, %23, %cst_18 {dimension_numbers = #tpu.dot_dimension_numbers<[1], [0], [0], [1], [0, 0, 1, 1], [], []>} : vector<128x12xbf16>, vector<12x128xbf16>, vector<128x128xf32> -> vector<128x128xf32>
    %28 = arith.addf %25, %27 : vector<128x128xf32>
    %c0_19 = arith.constant 0 : index
    %c0_20 = arith.constant 0 : index
    %29 = vector.load %arg3[%c0_19, %c0_20] : memref<5x128xf32, #tpu.memory_space<vmem>>, vector<1x128xf32>
    %30 = vector.broadcast %29 : vector<1x128xf32> to vector<128x128xf32>
    %31 = arith.addf %28, %30 : vector<128x128xf32>
    %cst_21 = arith.constant 0.000000e+00 : f32
    %32 = vector.broadcast %cst_21 : f32 to vector<128x128xf32>
    %33 = arith.cmpf oge, %31, %32 : vector<128x128xf32>
    %cst_22 = arith.constant 1.000000e-01 : f32
    %34 = vector.broadcast %cst_22 : f32 to vector<128x128xf32>
    %35 = arith.mulf %34, %31 : vector<128x128xf32>
    %36 = arith.select %33, %31, %35 : vector<128x128xi1>, vector<128x128xf32>
    %c8_23 = arith.constant 8 : index
    %c0_24 = arith.constant 0 : index
    %37 = vector.load %arg6[%c8_23, %c0_24] : memref<136x128xf32, #tpu.memory_space<vmem>>, vector<128x128xf32>
    tpu.vector_store %arg6[%c8_23, %c0_24], %36 {strides = array<i32>} : memref<136x128xf32, #tpu.memory_space<vmem>>, vector<128x128xf32>,
    %c7_25 = arith.constant 7 : index
    %c0_26 = arith.constant 0 : index
    %38 = tpu.strided_load %arg6[%c7_25, %c0_26] {strides = array<i32: 2, 1>} : memref<136x128xf32, #tpu.memory_space<vmem>>, vector<64x128xf32>
    %c8_27 = arith.constant 8 : index
    %c0_28 = arith.constant 0 : index
    %39 = tpu.strided_load %arg6[%c8_27, %c0_28] {strides = array<i32: 2, 1>} : memref<136x128xf32, #tpu.memory_space<vmem>>, vector<64x128xf32>
    %40 = tpu.iota {dimensions = array<i32: 0>} : vector<64x1xi32>
    %c7_i32 = arith.constant 7 : i32
    %41 = vector.broadcast %c7_i32 : i32 to vector<64x1xi32>
    %42 = arith.andi %40, %41 : vector<64x1xi32>
    %c0_i32_29 = arith.constant 0 : i32
    %43 = vector.broadcast %c0_i32_29 : i32 to vector<64x1xi32>
    %44 = arith.cmpi eq, %42, %43 : vector<64x1xi32>
    %cst_30 = arith.constant 0.000000e+00 : f32
    %45 = vector.shape_cast %44 : vector<64x1xi1> to vector<64x1xi1>
    %46 = vector.broadcast %45 : vector<64x1xi1> to vector<64x128xi1>
    %47 = vector.broadcast %cst_30 : f32 to vector<64x128xf32>
    %48 = arith.select %46, %47, %38 : vector<64x128xi1>, vector<64x128xf32>
    %c2 = arith.constant 2 : index
    %c0_31 = arith.constant 0 : index
    %c0_32 = arith.constant 0 : index
    %49 = vector.load %arg2[%c2, %c0_31, %c0_32] : memref<10x128x128xbf16, #tpu.memory_space<vmem>>, vector<1x128x128xbf16>
    %50 = vector.shape_cast %49 : vector<1x128x128xbf16> to vector<128x128xbf16>
    %c3 = arith.constant 3 : index
    %c0_33 = arith.constant 0 : index
    %c0_34 = arith.constant 0 : index
    %51 = vector.load %arg2[%c3, %c0_33, %c0_34] : memref<10x128x128xbf16, #tpu.memory_space<vmem>>, vector<1x128x128xbf16>
    %52 = vector.shape_cast %51 : vector<1x128x128xbf16> to vector<128x128xbf16>
    %53 = arith.truncf %48 : vector<64x128xf32> to vector<64x128xbf16>
    %cst_35 = arith.constant dense<0.000000e+00> : vector<64x128xf32>
    %54 = tpu.matmul %53, %50, %cst_35 {dimension_numbers = #tpu.dot_dimension_numbers<[1], [0], [0], [1], [0, 0, 1, 1], [], []>} : vector<64x128xbf16>, vector<128x128xbf16>, vector<64x128xf32> -> vector<64x128xf32>
    %55 = arith.truncf %39 : vector<64x128xf32> to vector<64x128xbf16>
    %cst_36 = arith.constant dense<0.000000e+00> : vector<64x128xf32>
    %56 = tpu.matmul %55, %52, %cst_36 {dimension_numbers = #tpu.dot_dimension_numbers<[1], [0], [0], [1], [0, 0, 1, 1], [], []>} : vector<64x128xbf16>, vector<128x128xbf16>, vector<64x128xf32> -> vector<64x128xf32>
    %57 = arith.addf %54, %56 : vector<64x128xf32>
    %c1_37 = arith.constant 1 : index
    %c0_38 = arith.constant 0 : index
    %58 = vector.load %arg3[%c1_37, %c0_38] : memref<5x128xf32, #tpu.memory_space<vmem>>, vector<1x128xf32>
    %59 = vector.broadcast %58 : vector<1x128xf32> to vector<64x128xf32>
    %60 = arith.addf %57, %59 : vector<64x128xf32>
    %cst_39 = arith.constant 0.000000e+00 : f32
    %61 = vector.broadcast %cst_39 : f32 to vector<64x128xf32>
    %62 = arith.cmpf oge, %60, %61 : vector<64x128xf32>
    %cst_40 = arith.constant 1.000000e-01 : f32
    %63 = vector.broadcast %cst_40 : f32 to vector<64x128xf32>
    %64 = arith.mulf %63, %60 : vector<64x128xf32>
    %65 = arith.select %62, %60, %64 : vector<64x128xi1>, vector<64x128xf32>
    %c8_41 = arith.constant 8 : index
    %c0_42 = arith.constant 0 : index
    %66 = vector.load %arg6[%c8_41, %c0_42] : memref<136x128xf32, #tpu.memory_space<vmem>>, vector<64x128xf32>
    tpu.vector_store %arg6[%c8_41, %c0_42], %65 {strides = array<i32>} : memref<136x128xf32, #tpu.memory_space<vmem>>, vector<64x128xf32>,
    %c7_43 = arith.constant 7 : index
    %c0_44 = arith.constant 0 : index
    %67 = tpu.strided_load %arg6[%c7_43, %c0_44] {strides = array<i32: 2, 1>} : memref<136x128xf32, #tpu.memory_space<vmem>>, vector<32x128xf32>
    %c8_45 = arith.constant 8 : index
    %c0_46 = arith.constant 0 : index
    %68 = tpu.strided_load %arg6[%c8_45, %c0_46] {strides = array<i32: 2, 1>} : memref<136x128xf32, #tpu.memory_space<vmem>>, vector<32x128xf32>
    %69 = tpu.iota {dimensions = array<i32: 0>} : vector<32x1xi32>
    %c3_i32 = arith.constant 3 : i32
    %70 = vector.broadcast %c3_i32 : i32 to vector<32x1xi32>
    %71 = arith.andi %69, %70 : vector<32x1xi32>
    %c0_i32_47 = arith.constant 0 : i32
    %72 = vector.broadcast %c0_i32_47 : i32 to vector<32x1xi32>
    %73 = arith.cmpi eq, %71, %72 : vector<32x1xi32>
    %cst_48 = arith.constant 0.000000e+00 : f32
    %74 = vector.shape_cast %73 : vector<32x1xi1> to vector<32x1xi1>
    %75 = vector.broadcast %74 : vector<32x1xi1> to vector<32x128xi1>
    %76 = vector.broadcast %cst_48 : f32 to vector<32x128xf32>
    %77 = arith.select %75, %76, %67 : vector<32x128xi1>, vector<32x128xf32>
    %c4 = arith.constant 4 : index
    %c0_49 = arith.constant 0 : index
    %c0_50 = arith.constant 0 : index
    %78 = vector.load %arg2[%c4, %c0_49, %c0_50] : memref<10x128x128xbf16, #tpu.memory_space<vmem>>, vector<1x128x128xbf16>
    %79 = vector.shape_cast %78 : vector<1x128x128xbf16> to vector<128x128xbf16>
    %c5 = arith.constant 5 : index
    %c0_51 = arith.constant 0 : index
    %c0_52 = arith.constant 0 : index
    %80 = vector.load %arg2[%c5, %c0_51, %c0_52] : memref<10x128x128xbf16, #tpu.memory_space<vmem>>, vector<1x128x128xbf16>
    %81 = vector.shape_cast %80 : vector<1x128x128xbf16> to vector<128x128xbf16>
    %82 = arith.truncf %77 : vector<32x128xf32> to vector<32x128xbf16>
    %cst_53 = arith.constant dense<0.000000e+00> : vector<32x128xf32>
    %83 = tpu.matmul %82, %79, %cst_53 {dimension_numbers = #tpu.dot_dimension_numbers<[1], [0], [0], [1], [0, 0, 1, 1], [], []>} : vector<32x128xbf16>, vector<128x128xbf16>, vector<32x128xf32> -> vector<32x128xf32>
    %84 = arith.truncf %68 : vector<32x128xf32> to vector<32x128xbf16>
    %cst_54 = arith.constant dense<0.000000e+00> : vector<32x128xf32>
    %85 = tpu.matmul %84, %81, %cst_54 {dimension_numbers = #tpu.dot_dimension_numbers<[1], [0], [0], [1], [0, 0, 1, 1], [], []>} : vector<32x128xbf16>, vector<128x128xbf16>, vector<32x128xf32> -> vector<32x128xf32>
    %86 = arith.addf %83, %85 : vector<32x128xf32>
    %c2_55 = arith.constant 2 : index
    %c0_56 = arith.constant 0 : index
    %87 = vector.load %arg3[%c2_55, %c0_56] : memref<5x128xf32, #tpu.memory_space<vmem>>, vector<1x128xf32>
    %88 = vector.broadcast %87 : vector<1x128xf32> to vector<32x128xf32>
    %89 = arith.addf %86, %88 : vector<32x128xf32>
    %cst_57 = arith.constant 0.000000e+00 : f32
    %90 = vector.broadcast %cst_57 : f32 to vector<32x128xf32>
    %91 = arith.cmpf oge, %89, %90 : vector<32x128xf32>
    %cst_58 = arith.constant 1.000000e-01 : f32
    %92 = vector.broadcast %cst_58 : f32 to vector<32x128xf32>
    %93 = arith.mulf %92, %89 : vector<32x128xf32>
    %94 = arith.select %91, %89, %93 : vector<32x128xi1>, vector<32x128xf32>
    %c8_59 = arith.constant 8 : index
    %c0_60 = arith.constant 0 : index
    %95 = vector.load %arg6[%c8_59, %c0_60] : memref<136x128xf32, #tpu.memory_space<vmem>>, vector<32x128xf32>
    tpu.vector_store %arg6[%c8_59, %c0_60], %94 {strides = array<i32>} : memref<136x128xf32, #tpu.memory_space<vmem>>, vector<32x128xf32>,
    %c7_61 = arith.constant 7 : index
    %c0_62 = arith.constant 0 : index
    %96 = tpu.strided_load %arg6[%c7_61, %c0_62] {strides = array<i32: 2, 1>} : memref<136x128xf32, #tpu.memory_space<vmem>>, vector<16x128xf32>
    %c8_63 = arith.constant 8 : index
    %c0_64 = arith.constant 0 : index
    %97 = tpu.strided_load %arg6[%c8_63, %c0_64] {strides = array<i32: 2, 1>} : memref<136x128xf32, #tpu.memory_space<vmem>>, vector<16x128xf32>
    %98 = tpu.iota {dimensions = array<i32: 0>} : vector<16x1xi32>
    %c1_i32 = arith.constant 1 : i32
    %99 = vector.broadcast %c1_i32 : i32 to vector<16x1xi32>
    %100 = arith.andi %98, %99 : vector<16x1xi32>
    %c0_i32_65 = arith.constant 0 : i32
    %101 = vector.broadcast %c0_i32_65 : i32 to vector<16x1xi32>
    %102 = arith.cmpi eq, %100, %101 : vector<16x1xi32>
    %cst_66 = arith.constant 0.000000e+00 : f32
    %103 = vector.shape_cast %102 : vector<16x1xi1> to vector<16x1xi1>
    %104 = vector.broadcast %103 : vector<16x1xi1> to vector<16x128xi1>
    %105 = vector.broadcast %cst_66 : f32 to vector<16x128xf32>
    %106 = arith.select %104, %105, %96 : vector<16x128xi1>, vector<16x128xf32>
    %c6 = arith.constant 6 : index
    %c0_67 = arith.constant 0 : index
    %c0_68 = arith.constant 0 : index
    %107 = vector.load %arg2[%c6, %c0_67, %c0_68] : memref<10x128x128xbf16, #tpu.memory_space<vmem>>, vector<1x128x128xbf16>
    %108 = vector.shape_cast %107 : vector<1x128x128xbf16> to vector<128x128xbf16>
    %c7_69 = arith.constant 7 : index
    %c0_70 = arith.constant 0 : index
    %c0_71 = arith.constant 0 : index
    %109 = vector.load %arg2[%c7_69, %c0_70, %c0_71] : memref<10x128x128xbf16, #tpu.memory_space<vmem>>, vector<1x128x128xbf16>
    %110 = vector.shape_cast %109 : vector<1x128x128xbf16> to vector<128x128xbf16>
    %111 = arith.truncf %106 : vector<16x128xf32> to vector<16x128xbf16>
    %cst_72 = arith.constant dense<0.000000e+00> : vector<16x128xf32>
    %112 = tpu.matmul %111, %108, %cst_72 {dimension_numbers = #tpu.dot_dimension_numbers<[1], [0], [0], [1], [0, 0, 1, 1], [], []>} : vector<16x128xbf16>, vector<128x128xbf16>, vector<16x128xf32> -> vector<16x128xf32>
    %113 = arith.truncf %97 : vector<16x128xf32> to vector<16x128xbf16>
    %cst_73 = arith.constant dense<0.000000e+00> : vector<16x128xf32>
    %114 = tpu.matmul %113, %110, %cst_73 {dimension_numbers = #tpu.dot_dimension_numbers<[1], [0], [0], [1], [0, 0, 1, 1], [], []>} : vector<16x128xbf16>, vector<128x128xbf16>, vector<16x128xf32> -> vector<16x128xf32>
    %115 = arith.addf %112, %114 : vector<16x128xf32>
    %c3_74 = arith.constant 3 : index
    %c0_75 = arith.constant 0 : index
    %116 = vector.load %arg3[%c3_74, %c0_75] : memref<5x128xf32, #tpu.memory_space<vmem>>, vector<1x128xf32>
    %117 = vector.broadcast %116 : vector<1x128xf32> to vector<16x128xf32>
    %118 = arith.addf %115, %117 : vector<16x128xf32>
    %cst_76 = arith.constant 0.000000e+00 : f32
    %119 = vector.broadcast %cst_76 : f32 to vector<16x128xf32>
    %120 = arith.cmpf oge, %118, %119 : vector<16x128xf32>
    %cst_77 = arith.constant 1.000000e-01 : f32
    %121 = vector.broadcast %cst_77 : f32 to vector<16x128xf32>
    %122 = arith.mulf %121, %118 : vector<16x128xf32>
    %123 = arith.select %120, %118, %122 : vector<16x128xi1>, vector<16x128xf32>
    %c8_78 = arith.constant 8 : index
    %c0_79 = arith.constant 0 : index
    %124 = vector.load %arg6[%c8_78, %c0_79] : memref<136x128xf32, #tpu.memory_space<vmem>>, vector<16x128xf32>
    tpu.vector_store %arg6[%c8_78, %c0_79], %123 {strides = array<i32>} : memref<136x128xf32, #tpu.memory_space<vmem>>, vector<16x128xf32>,
    %c7_80 = arith.constant 7 : index
    %c0_81 = arith.constant 0 : index
    %125 = tpu.strided_load %arg6[%c7_80, %c0_81] {strides = array<i32: 2, 1>} : memref<136x128xf32, #tpu.memory_space<vmem>>, vector<8x128xf32>
    %c8_82 = arith.constant 8 : index
    %c0_83 = arith.constant 0 : index
    %126 = tpu.strided_load %arg6[%c8_82, %c0_83] {strides = array<i32: 2, 1>} : memref<136x128xf32, #tpu.memory_space<vmem>>, vector<8x128xf32>
    %127 = tpu.iota {dimensions = array<i32: 0>} : vector<8x1xi32>
    %c0_i32_84 = arith.constant 0 : i32
    %128 = vector.broadcast %c0_i32_84 : i32 to vector<8x1xi32>
    %129 = arith.andi %127, %128 : vector<8x1xi32>
    %c0_i32_85 = arith.constant 0 : i32
    %130 = vector.broadcast %c0_i32_85 : i32 to vector<8x1xi32>
    %131 = arith.cmpi eq, %129, %130 : vector<8x1xi32>
    %cst_86 = arith.constant 0.000000e+00 : f32
    %132 = vector.shape_cast %131 : vector<8x1xi1> to vector<8x1xi1>
    %133 = vector.broadcast %132 : vector<8x1xi1> to vector<8x128xi1>
    %134 = vector.broadcast %cst_86 : f32 to vector<8x128xf32>
    %135 = arith.select %133, %134, %125 : vector<8x128xi1>, vector<8x128xf32>
    %c8_87 = arith.constant 8 : index
    %c0_88 = arith.constant 0 : index
    %c0_89 = arith.constant 0 : index
    %136 = vector.load %arg2[%c8_87, %c0_88, %c0_89] : memref<10x128x128xbf16, #tpu.memory_space<vmem>>, vector<1x128x128xbf16>
    %137 = vector.shape_cast %136 : vector<1x128x128xbf16> to vector<128x128xbf16>
    %c9 = arith.constant 9 : index
    %c0_90 = arith.constant 0 : index
    %c0_91 = arith.constant 0 : index
    %138 = vector.load %arg2[%c9, %c0_90, %c0_91] : memref<10x128x128xbf16, #tpu.memory_space<vmem>>, vector<1x128x128xbf16>
    %139 = vector.shape_cast %138 : vector<1x128x128xbf16> to vector<128x128xbf16>
    %140 = arith.truncf %135 : vector<8x128xf32> to vector<8x128xbf16>
    %cst_92 = arith.constant dense<0.000000e+00> : vector<8x128xf32>
    %141 = tpu.matmul %140, %137, %cst_92 {dimension_numbers = #tpu.dot_dimension_numbers<[1], [0], [0], [1], [0, 0, 1, 1], [], []>} : vector<8x128xbf16>, vector<128x128xbf16>, vector<8x128xf32> -> vector<8x128xf32>
    %142 = arith.truncf %126 : vector<8x128xf32> to vector<8x128xbf16>
    %cst_93 = arith.constant dense<0.000000e+00> : vector<8x128xf32>
    %143 = tpu.matmul %142, %139, %cst_93 {dimension_numbers = #tpu.dot_dimension_numbers<[1], [0], [0], [1], [0, 0, 1, 1], [], []>} : vector<8x128xbf16>, vector<128x128xbf16>, vector<8x128xf32> -> vector<8x128xf32>
    %144 = arith.addf %141, %143 : vector<8x128xf32>
    %c4_94 = arith.constant 4 : index
    %c0_95 = arith.constant 0 : index
    %145 = vector.load %arg3[%c4_94, %c0_95] : memref<5x128xf32, #tpu.memory_space<vmem>>, vector<1x128xf32>
    %146 = vector.broadcast %145 : vector<1x128xf32> to vector<8x128xf32>
    %147 = arith.addf %144, %146 : vector<8x128xf32>
    %cst_96 = arith.constant 0.000000e+00 : f32
    %148 = vector.broadcast %cst_96 : f32 to vector<8x128xf32>
    %149 = arith.cmpf oge, %147, %148 : vector<8x128xf32>
    %cst_97 = arith.constant 1.000000e-01 : f32
    %150 = vector.broadcast %cst_97 : f32 to vector<8x128xf32>
    %151 = arith.mulf %150, %147 : vector<8x128xf32>
    %152 = arith.select %149, %147, %151 : vector<8x128xi1>, vector<8x128xf32>
    %c0_98 = arith.constant 0 : index
    %c0_99 = arith.constant 0 : index
    %153 = vector.load %arg4[%c0_98, %c0_99] : memref<8x128xf32, #tpu.memory_space<vmem>>, vector<8x128xf32>
    tpu.vector_store %arg4[%c0_98, %c0_99], %152 {strides = array<i32>} : memref<8x128xf32, #tpu.memory_space<vmem>>, vector<8x128xf32>,
    return
  }
  func.func @transform_0(%arg0: i32) -> (i32, i32, i32) {
    %c0_i32 = arith.constant 0 : i32
    %c0_i32_0 = arith.constant 0 : i32
    %c0_i32_1 = arith.constant 0 : i32
    return %arg0, %c0_i32, %c0_i32_0 : i32, i32, i32
  }
  func.func @transform_1(%arg0: i32) -> (i32, i32, i32) {
    %c0_i32 = arith.constant 0 : i32
    %c0_i32_0 = arith.constant 0 : i32
    %c0_i32_1 = arith.constant 0 : i32
    %c0_i32_2 = arith.constant 0 : i32
    return %c0_i32, %c0_i32_0, %c0_i32_1 : i32, i32, i32
  }
  func.func @transform_2(%arg0: i32) -> (i32, i32) {
    %c0_i32 = arith.constant 0 : i32
    %c0_i32_0 = arith.constant 0 : i32
    %c0_i32_1 = arith.constant 0 : i32
    return %c0_i32, %c0_i32_0 : i32, i32
  }
  func.func @transform_3(%arg0: i32) -> (i32, i32) {
    %c0_i32 = arith.constant 0 : i32
    %c0_i32_0 = arith.constant 0 : i32
    return %arg0, %c0_i32 : i32, i32
  }
}

</mosaic_0001>

<bundles_post_ra>
// kernel: tpu_custom_call.1
= control target key start
LH: loop header
LB: loop body
LE: loop exit
PB: predicated region body
PF: predicated region fallthrough
CT: control target
= control target key end

     0   :  { %8 = vsyncpa [#allocation5], 0  ;;  %s3356_s0 = inlined_call_operand.vmem [shape: f32[16,32,12], index: 0, kind: input, shape index: {}]   ;;  %s3357_s1 = inlined_call_operand.vmem [shape: bf16[10,128,128], index: 1, kind: input, shape index: {}]   ;;  %s3358_s2 = inlined_call_operand.vmem [shape: f32[5,128], index: 2, kind: input, shape index: {}]   ;;  %s3359_s3 = inlined_call_operand.hbm [shape: f32[16,128], index: 3, kind: output, shape index: {}]  }
   0x1   :  { %10 = vsyncpa [#allocation5 + $0x1], 0  ;;  %s2788_s12 = smov 0   ;;  %s2790_s13 = smov 0  }
   0x2   :  { %s2792_s14 = smov 0   ;;  %s2794_s15 = smov 0  }
   0x3 LB: > { %s2809_s16 = sadd.s32 4294967295, %s2762_s15   ;;  %s1980_s17 = sadd.s32 4294967294, %s2762_s15   ;;  %s2762_s15 = sphi %s2794_s15, %s3385_s15   ;;  %s2758_s14 = sphi %s2792_s14, %s3384_s14   ;;  %s2754_s13 = sphi %s2790_s13, %s3383_s13   ;;  %s2750_s12 = sphi %s2788_s12, %s3382_s12  }
   0x4   : > { %s2813_s18 = sadd.s32 1, %s2762_s15   ;;  %s91_s19 = sadd.s32 1, %s2758_s14 }
   0x5   : > { %s88_s20 = ssub.s32 %s2762_s15, %s2813_s18  ;;  %p101_p0 = scmp.ne.s32.totalorder %s2758_s14, %s2754_s13 }
   0x6   : > { %p89_p1 = scmp.eq.s32.totalorder %s88_s20, 0  ;;  %p102_p2 = scmp.eq.s32.totalorder %s2809_s16, 1 }
   0x7   : > { %p107_p3 = scmp.ne.s32.totalorder %s2754_s13, %s2750_s12  ;;  %p108_p4 = scmp.eq.s32.totalorder %s1980_s17, 1 }
   0x8   : > { %s2824_s21 = scalar_select %p89_p1, %s2758_s14, %s91_s19  }
   0x9   : > { %p2826_p5 = por %p102_p2, %p101_p0  ;;  %p2830_p6 = por %p108_p4, %p107_p3 }
   0xa   : > { %p1983_p7 = scmp.ge.s32.totalorder %s2762_s15, 1  ;;  %p142_p8 = scmp.lt.s32.totalorder %s2762_s15, 3 }
   0xc   : > { %p143_p9 = pnand %p1983_p7, %p142_p8 }
   0xd   : > { %v2633_v0 = vld [vmem:[%s3357_s1 + $0x40] sm:$0xff] (!%p143_p9)   ;;  %vm453_vm0 = vcmask (!%p143_p9), 1045504   ;;  %s1985_s26 = sshll.u32 (!%p143_p9), %s2809_s16, 3  ;;  %vm175_vm1 = vcmask (!%p143_p9), 97280   ;;  %v2764_v4 = vmov (!%p143_p9), 0.0   ;;  %v2636_v5 = vld [vmem:[%s3357_s1 + $0xc8] sm:$0xff] (!%p143_p9)   ;;  %v306_v6 = vlaneseq (!%p143_p9) }
   0xe   : > { %146 = sbr.rel (%p143_p9) target bundleno = 1339 (0x53b), region = 32  ;;  %2589 = vmatprep.subr.msk.bf16.mxu0 (!%p143_p9), %vm453_vm0, %v2633_v0  ;;  %v455_v1 = vsel (!%p143_p9), %vm453_vm0, %v2633_v0, 0  ;;  %p168_p10 = scmp.lt.s32.totalorder (!%p143_p9), %s1985_s26, 15  ;;  %v2634_v2 = vld [vmem:[%s3357_s1] sm:$0xff] (!%p143_p9)   ;;  %176 = vst.msk [vmem:[#allocation2] sm:$0xff] (!%p143_p9), %vm175_vm1, %v2764_v4  ;;  %177 = vst [vmem:[#allocation3] sm:$0xff] (!%p143_p9), %v2764_v4 }
   0xf   : > { %v2635_v3 = vld [vmem:[%s3357_s1 + $0xc0] sm:$0xff] (!%p143_p9)   ;;  %2358 = vmatpush3.bf16.msra.mxu0 (!%p143_p9), %v455_v1  ;;  %v2881_v19 = vshrl.u32 (!%p143_p9), %v306_v6, 7  ;;  %v584_v29 = vsel (!%p143_p9), %vm453_vm0, %v2634_v2, 0  ;;  %v2652_v6 = vld [vmem:[%s3357_s1 + $0x148] sm:$0xff] (!%p143_p9)   ;;  %s164_s25 = sand.u32 (!%p143_p9), 1, %s2754_s13   ;;  %s2241_s29 = sshll.u32 (!%p143_p9), %s2809_s16, 7 }
  0x10   : > { %2590 = vmatprep.subr.msk.bf16.mxu0 (!%p143_p9), %vm453_vm0, %v2634_v2  ;;  %2393 = vmatprep.subr.bf16.mxu1 (!%p143_p9), %v2635_v3  ;;  %s3314_s7 = scalar_lea.hbm (!%p143_p9), %s3359_s3, %s2241_s29  ;;  %s1908_s8 = scalar_lea.sflag (!%p143_p9), [#allocation5], %s164_s25 }
  0x11   : > { %2394 = vmatpush3.bf16.msra.mxu1 (!%p143_p9), %v2635_v3  ;;  %v2909_v33 = vadd.s32 (!%p143_p9), 16, %v2881_v19  ;;  %v2917_v37 = vadd.s32 (!%p143_p9), 32, %v2881_v19  ;;  %v2920_v38 = vadd.s32 (!%p143_p9), 48, %v2881_v19  ;;  %v315_v42 = vadd.s32 (!%p143_p9), 64, %v2881_v19  ;;  %s2767_s16 = smov (!%p143_p9), [#allocation4]  }
  0x12   : > { %2395 = vmatprep.subr.bf16.mxu1 (!%p143_p9), %v2636_v5  ;;  %v317_v47 = vadd.s32 (!%p143_p9), 80, %v2881_v19  ;;  %v319_v48 = vadd.s32 (!%p143_p9), 96, %v2881_v19  ;;  %v321_v53 = vadd.s32 (!%p143_p9), 112, %v2881_v19  ;;  %v323_v57 = vand.u32 (!%p143_p9), 15, %v2881_v19  ;;  %s2704_s10 = sshll.u32 (!%p143_p9), %s2767_s16, 4  ;;  %s2705_s10 = int_to_ptr.vmem [resolvable:$false] %s2704_s10 }
  0x13   : > { %v325_v58 = vand.u32 (!%p143_p9), 15, %v2909_v33  ;;  %v327_v59 = vand.u32 (!%p143_p9), 15, %v2917_v37  ;;  %v329_v60 = vand.u32 (!%p143_p9), 15, %v2920_v38  ;;  %v331_v63 = vand.u32 (!%p143_p9), 15, %v315_v42  ;;  %s2706_s11 = scalar_lea.vmem (!%p143_p9), %s2705_s10, 256 }
  0x14   : > { %v333_v0 = vand.u32 (!%p143_p9), 15, %v317_v47  ;;  %v335_v3 = vand.u32 (!%p143_p9), 15, %v319_v48  ;;  %vm2947_vm2 = vcmp.eq.s32.totalorder (!%p143_p9), %v323_v57, 0 }
  0x15   : > { %s3387_s26 = smov (!%p168_p10, %s1985_s26), 15  ;;  %2396 = vmatpush3.bf16.msra.mxu1 %v2636_v5  ;;  %v337_v5 = vand.u32 15, %v321_v53  ;;  %vm2951_vm3 = vcmp.eq.s32.totalorder %v325_v58, 0  ;;  %vm2955_vm4 = vcmp.eq.s32.totalorder %v327_v59, 0  ;;  %vm2959_vm5 = vcmp.eq.s32.totalorder %v329_v60, 0 }
  0x16   : > { %s2244_s6 = sshll.u32 %s3387_s26, 5  ;;  %vm2963_vm6 = vcmp.eq.s32.totalorder %v331_v63, 0  ;;  %vm2967_vm7 = vcmp.eq.s32.totalorder %v333_v0, 0  ;;  %vm2971_vm8 = vcmp.eq.s32.totalorder %v335_v3, 0  ;;  %v2639_v63 = vld [vmem:[%s3357_s1 + $0xe0] sm:$0xff]   ;;  %v2640_v0 = vld [vmem:[%s3357_s1 + $0xe8] sm:$0xff]  }
  0x17   : > { %s2858_s9 = scalar_lea.vmem %s3356_s0, %s2244_s6  ;;  %vm2975_vm9 = vcmp.eq.s32.totalorder %v337_v5, 0  ;;  %v3029_v3 = vld [vmem:[%s3357_s1 + $0x80] sm:$0xff]   ;;  %s1984_s26 = sshll.u32 %s164_s25, 3 }
  0x18   : > { %v178_v7 = vld [vmem:[%s2858_s9] sm:$0xff]  ;;  %v179_v8 = vld [vmem:[%s2858_s9 + $0x8] sm:$0xff]  ;;  %v180_v9 = vld [vmem:[%s2858_s9 + $0x10] sm:$0xff]  ;;  %s166_s30 = scalar_lea.vmem [#allocation4], %s1984_s26 }
  0x19   : > { %v181_v10 = vld [vmem:[%s2858_s9 + $0x18] sm:$0xff]  ;;  %210 = vst.msk [vmem:[#allocation2 + $0x8] sm:$0xff] %vm175_vm1, %v178_v7  ;;  %211 = vst.msk [vmem:[#allocation2 + $0x10] sm:$0xff] %vm175_vm1, %v179_v8  ;;  %v182_v11 = vld [vmem:[%s2858_s9 + $0x20] sm:$0xff]  ;;  %s1921_s4 = sshll.u32 %s166_s30, 4  ;;  %s3316_s4 = int_to_ptr.vmem [resolvable:$true] %s1921_s4 }
  0x1a   : > { %212 = vst.msk [vmem:[#allocation2 + $0x18] sm:$0xff] %vm175_vm1, %v180_v9  ;;  %v183_v12 = vld [vmem:[%s2858_s9 + $0x28] sm:$0xff]  ;;  %213 = vst.msk [vmem:[#allocation2 + $0x20] sm:$0xff] %vm175_vm1, %v181_v10  ;;  %v184_v13 = vld [vmem:[%s2858_s9 + $0x30] sm:$0xff]  ;;  %p2707_p0 = scmp.lt.s32.totalorder %s3316_s4, %s2705_s10 }
  0x1b   : > { %v185_v14 = vld [vmem:[%s2858_s9 + $0x38] sm:$0xff]  ;;  %214 = vst.msk [vmem:[#allocation2 + $0x28] sm:$0xff] %vm175_vm1, %v182_v11  ;;  %215 = vst.msk [vmem:[#allocation2 + $0x30] sm:$0xff] %vm175_vm1, %v183_v12  ;;  %v186_v15 = vld [vmem:[%s2858_s9 + $0x40] sm:$0xff] }
  0x1c   : > { %216 = vst.msk [vmem:[#allocation2 + $0x38] sm:$0xff] %vm175_vm1, %v184_v13  ;;  %217 = vst.msk [vmem:[#allocation2 + $0x40] sm:$0xff] %vm175_vm1, %v185_v14  ;;  %v187_v16 = vld [vmem:[%s2858_s9 + $0x48] sm:$0xff]  ;;  %v188_v17 = vld [vmem:[%s2858_s9 + $0x50] sm:$0xff] }
  0x1d   : > { %v189_v18 = vld [vmem:[%s2858_s9 + $0x58] sm:$0xff]  ;;  %218 = vst.msk [vmem:[#allocation2 + $0x48] sm:$0xff] %vm175_vm1, %v186_v15  ;;  %219 = vst.msk [vmem:[#allocation2 + $0x50] sm:$0xff] %vm175_vm1, %v187_v16  ;;  %v190_v20 = vld [vmem:[%s2858_s9 + $0x60] sm:$0xff] }
  0x1e   : > { %220 = vst.msk [vmem:[#allocation2 + $0x58] sm:$0xff] %vm175_vm1, %v188_v17  ;;  %221 = vst.msk [vmem:[#allocation2 + $0x60] sm:$0xff] %vm175_vm1, %v189_v18  ;;  %v191_v21 = vld [vmem:[%s2858_s9 + $0x68] sm:$0xff]  ;;  %v192_v22 = vld [vmem:[%s2858_s9 + $0x70] sm:$0xff] }
  0x1f   : > { %v193_v23 = vld [vmem:[%s2858_s9 + $0x78] sm:$0xff]  ;;  %222 = vst.msk [vmem:[#allocation2 + $0x68] sm:$0xff] %vm175_vm1, %v190_v20  ;;  %223 = vst.msk [vmem:[#allocation2 + $0x70] sm:$0xff] %vm175_vm1, %v191_v21  ;;  %v194_v24 = vld [vmem:[%s2858_s9 + $0x80] sm:$0xff] }
  0x20   : > { %224 = vst.msk [vmem:[#allocation2 + $0x78] sm:$0xff] %vm175_vm1, %v192_v22  ;;  %v195_v25 = vld [vmem:[%s2858_s9 + $0x88] sm:$0xff]  ;;  %225 = vst.msk [vmem:[#allocation2 + $0x80] sm:$0xff] %vm175_vm1, %v193_v23  ;;  %v196_v26 = vld [vmem:[%s2858_s9 + $0x90] sm:$0xff] }
  0x21   : > { %v197_v27 = vld [vmem:[%s2858_s9 + $0x98] sm:$0xff]  ;;  %226 = vst.msk [vmem:[#allocation2 + $0x88] sm:$0xff] %vm175_vm1, %v194_v24  ;;  %227 = vst.msk [vmem:[#allocation2 + $0x90] sm:$0xff] %vm175_vm1, %v195_v25  ;;  %v198_v28 = vld [vmem:[%s2858_s9 + $0xa0] sm:$0xff] }
  0x22   : > { %228 = vst.msk [vmem:[#allocation2 + $0x98] sm:$0xff] %vm175_vm1, %v196_v26  ;;  %229 = vst.msk [vmem:[#allocation2 + $0xa0] sm:$0xff] %vm175_vm1, %v197_v27  ;;  %v199_v30 = vld [vmem:[%s2858_s9 + $0xa8] sm:$0xff]  ;;  %v200_v31 = vld [vmem:[%s2858_s9 + $0xb0] sm:$0xff] }
  0x23   : > { %v201_v32 = vld [vmem:[%s2858_s9 + $0xb8] sm:$0xff]  ;;  %230 = vst.msk [vmem:[#allocation2 + $0xa8] sm:$0xff] %vm175_vm1, %v198_v28  ;;  %v275_v34 = vld [vmem:[#allocation2 + $0x8] ss:$2 sm:$0xff]  ;;  %231 = vst.msk [vmem:[#allocation2 + $0xb0] sm:$0xff] %vm175_vm1, %v199_v30 }
  0x24   : > { %232 = vst.msk [vmem:[#allocation2 + $0xb8] sm:$0xff] %vm175_vm1, %v200_v31  ;;  %233 = vst.msk [vmem:[#allocation2 + $0xc0] sm:$0xff] %vm175_vm1, %v201_v32  ;;  %v202_v35 = vld [vmem:[%s2858_s9 + $0xc0] sm:$0xff]  ;;  %v203_v36 = vld [vmem:[%s2858_s9 + $0xc8] sm:$0xff] }
  0x25   : > { %v277_v39 = vld [vmem:[#allocation2 + $0x18] ss:$2 sm:$0xff]  ;;  %v279_v40 = vld [vmem:[#allocation2 + $0x28] ss:$2 sm:$0xff]  ;;  %234 = vst.msk [vmem:[#allocation2 + $0xc8] sm:$0xff] %vm175_vm1, %v202_v35  ;;  %235 = vst.msk [vmem:[#allocation2 + $0xd0] sm:$0xff] %vm175_vm1, %v203_v36 }
  0x26   : > { %v204_v41 = vld [vmem:[%s2858_s9 + $0xd0] sm:$0xff]  ;;  %v416_v43 = vpack.c.bf16 %v277_v39, %v275_v34  ;;  %v281_v44 = vld [vmem:[#allocation2 + $0x38] ss:$2 sm:$0xff]  ;;  %v207_v52 = vld [vmem:[%s2858_s9 + $0xe8] sm:$0xff] }
  0x27   : > { %v205_v45 = vld [vmem:[%s2858_s9 + $0xd8] sm:$0xff]  ;;  %236 = vst.msk [vmem:[#allocation2 + $0xd8] sm:$0xff] %vm175_vm1, %v204_v41  ;;  %v206_v46 = vld [vmem:[%s2858_s9 + $0xe0] sm:$0xff]  ;;  %v417_v49 = vpack.c.bf16 %v281_v44, %v279_v40  ;;  %v283_v50 = vld [vmem:[#allocation2 + $0x48] ss:$2 sm:$0xff] }
  0x28   : > { %v285_v51 = vld [vmem:[#allocation2 + $0x58] ss:$2 sm:$0xff]  ;;  %237 = vst.msk [vmem:[#allocation2 + $0xe0] sm:$0xff] %vm175_vm1, %v205_v45  ;;  %238 = vst.msk [vmem:[#allocation2 + $0xe8] sm:$0xff] %vm175_vm1, %v206_v46  ;;  %2359 = vmatprep.mubr.msk.bf16.mxu0 %vm175_vm1, %v416_v43  ;;  %v208_v55 = vld [vmem:[%s2858_s9 + $0xf0] sm:$0xff] }
  0x29   : > { %v418_v54 = vpack.c.bf16 %v285_v51, %v283_v50  ;;  %v209_v56 = vld [vmem:[%s2858_s9 + $0xf8] sm:$0xff]  ;;  %239 = vst.msk [vmem:[#allocation2 + $0xf0] sm:$0xff] %vm175_vm1, %v207_v52  ;;  %2360 = vmatmul.mubr.msk.bf16.vlgmr.msra.gmra.mrb[0].mxu0 %vm175_vm1, %v417_v49  ;;  %240 = vst.msk [vmem:[#allocation2 + $0xf8] sm:$0xff] %vm175_vm1, %v208_v55  ;;  %v287_v61 = vld [vmem:[#allocation2 + $0x68] ss:$2 sm:$0xff]  ;;  %s2700_s9 = scalar_lea.vmem %s3316_s4, 128 }
  0x2a   : > { %241 = vst.msk [vmem:[#allocation2 + $0x100] sm:$0xff] %vm175_vm1, %v209_v56  ;;  %2376 = vmatpush3.bf16.msra.mxu0 %v584_v29  ;;  %v289_v62 = vld [vmem:[#allocation2 + $0x78] ss:$2 sm:$0xff]  ;;  %v291_v1 = vld [vmem:[#allocation2 + $0x88] ss:$2 sm:$0xff]  ;;  %p2701_p11 = scmp.ne.s32.totalorder %s3316_s4, %s2700_s9  ;;  %p2708_p1 = scmp.lt.s32.totalorder %s2706_s11, %s2700_s9 }
  0x2b   : > { %2363 = vmatprep.mubr.msk.bf16.mxu0 %vm175_vm1, %v418_v54  ;;  %v293_v2 = vld [vmem:[#allocation2 + $0x98] ss:$2 sm:$0xff]  ;;  %v419_v7 = vpack.c.bf16 %v289_v62, %v287_v61  ;;  %v243_v12 = vld [vmem:[#allocation2 + $0x7] ss:$2 sm:$0xff]  ;;  %v295_v21 = vld [vmem:[#allocation2 + $0xa8] ss:$2 sm:$0xff] }
  0x2c   : > { %v420_v11 = vpack.c.bf16 %v293_v2, %v291_v1  ;;  %v247_v13 = vld [vmem:[#allocation2 + $0x27] ss:$2 sm:$0xff]  ;;  %v297_v22 = vld [vmem:[#allocation2 + $0xb8] ss:$2 sm:$0xff]  ;;  %v299_v25 = vld [vmem:[#allocation2 + $0xc8] ss:$2 sm:$0xff]  ;;  %p2702_p12 = pnand %p2701_p11, %p2826_p5  ;;  %p2709_p2 = por %p2708_p1, %p2707_p0 }
  0x2d   : > { %v251_v16 = vld [vmem:[#allocation2 + $0x47] ss:$2 sm:$0xff]  ;;  %v387_v26 = vsel %vm2947_vm2, 0.0, %v243_v12  ;;  %v389_v27 = vsel %vm2951_vm3, 0.0, %v247_v13  ;;  %v421_v40 = vpack.c.bf16 %v297_v22, %v295_v21  ;;  %v245_v44 = vld [vmem:[#allocation2 + $0x17] ss:$2 sm:$0xff] }
  0x2e   : > { %v255_v17 = vld [vmem:[#allocation2 + $0x67] ss:$2 sm:$0xff]  ;;  %v391_v30 = vsel %vm2955_vm4, 0.0, %v251_v16  ;;  %v408_v46 = vpack.c.bf16 %v245_v44, %v387_v26  ;;  %v249_v47 = vld [vmem:[#allocation2 + $0x37] ss:$2 sm:$0xff]  ;;  %p2703_p13 = pneg %p2702_p12 }
  0x2f   : > { %v259_v23 = vld [vmem:[#allocation2 + $0x87] ss:$2 sm:$0xff]  ;;  %v301_v29 = vld [vmem:[#allocation2 + $0xd8] ss:$2 sm:$0xff]  ;;  %v393_v31 = vsel %vm2959_vm5, 0.0, %v255_v17  ;;  %v409_v49 = vpack.c.bf16 %v249_v47, %v389_v27 }
  0x30   : > { %v263_v24 = vld [vmem:[#allocation2 + $0xa7] ss:$2 sm:$0xff]  ;;  %v395_v34 = vsel %vm2963_vm6, 0.0, %v259_v23  ;;  %v422_v41 = vpack.c.bf16 %v301_v29, %v299_v25  ;;  %v303_v42 = vld [vmem:[#allocation2 + $0xe8] ss:$2 sm:$0xff]  ;;  %v2638_v62 = vld [vmem:[%s3357_s1 + $0xd8] sm:$0xff]   ;;  %p2710_p3 = pnand %p2709_p2, %p2703_p13 }
  0x31   : > { %2364 = vmatmul.mubr.msk.bf16.gmra.mrb[4].mxu0 %vm175_vm1, %v419_v7  ;;  %v267_v28 = vld [vmem:[#allocation2 + $0xc7] ss:$2 sm:$0xff]  ;;  %v397_v35 = vsel %vm2967_vm7, 0.0, %v263_v24  ;;  %v305_v43 = vld [vmem:[#allocation2 + $0xf8] ss:$2 sm:$0xff] }
  0x32   : > { %2367 = vmatprep.mubr.msk.bf16.mxu0 %vm175_vm1, %v420_v11  ;;  %v271_v32 = vld [vmem:[#allocation2 + $0xe7] ss:$2 sm:$0xff]  ;;  %v399_v36 = vsel %vm2971_vm8, 0.0, %v267_v28  ;;  %v423_v45 = vpack.c.bf16 %v305_v43, %v303_v42  ;;  %v253_v48 = vld [vmem:[#allocation2 + $0x57] ss:$2 sm:$0xff] }
  0x33   : > { %v401_v39 = vsel %vm2975_vm9, 0.0, %v271_v32  ;;  %v410_v50 = vpack.c.bf16 %v253_v48, %v391_v30  ;;  %v257_v51 = vld [vmem:[#allocation2 + $0x77] ss:$2 sm:$0xff]  ;;  %v3041_v7 = vld [vmem:[%s3358_s2] ss:$0 sm:$0xff] }
  0x34   : > { %v261_v52 = vld [vmem:[#allocation2 + $0x97] ss:$2 sm:$0xff]  ;;  %v411_v53 = vpack.c.bf16 %v257_v51, %v393_v31 }
  0x35   : > { %v412_v54 = vpack.c.bf16 %v261_v52, %v395_v34  ;;  %v265_v55 = vld [vmem:[#allocation2 + $0xb7] ss:$2 sm:$0xff] }
  0x36   : > { %v269_v56 = vld [vmem:[#allocation2 + $0xd7] ss:$2 sm:$0xff]  ;;  %v413_v57 = vpack.c.bf16 %v265_v55, %v397_v35 }
  0x37   : > { %v414_v58 = vpack.c.bf16 %v269_v56, %v399_v36  ;;  %v273_v59 = vld [vmem:[#allocation2 + $0xf7] ss:$2 sm:$0xff] }
  0x38   : > { %v415_v60 = vpack.c.bf16 %v273_v59, %v401_v39  ;;  %v2637_v61 = vld [vmem:[%s3357_s1 + $0xd0] sm:$0xff]   ;;  %v2642_v2 = vld [vmem:[%s3357_s1 + $0xf8] sm:$0xff]   ;;  %v2651_v5 = vld [vmem:[%s3357_s1 + $0x140] sm:$0xff]  }
  0x39   : > { %2368 = vmatmul.mubr.msk.bf16.gmra.mrb[8].mxu0 %vm175_vm1, %v421_v40  ;;  %2397 = vmatprep.subr.bf16.mxu1 %v2637_v61  ;;  %v2641_v1 = vld [vmem:[%s3357_s1 + $0xf0] sm:$0xff]  }
  0x3a   : > { %2371 = vmatprep.mubr.msk.bf16.mxu0 %vm175_vm1, %v422_v41  ;;  %2398 = vmatpush3.bf16.msra.mxu1 %v2637_v61 }
  0x3b   : > { %2399 = vmatprep.subr.bf16.mxu1 %v2638_v62  ;;  %2441 = vmatprep.subr.bf16.mxu0 %v2651_v5 }
  0x3e   : > { %2400 = vmatpush3.bf16.msra.mxu1 %v2638_v62 }
  0x3f   : > { %2401 = vmatprep.subr.bf16.mxu1 %v2639_v63 }
  0x41   : > { %2372 = vmatmul.mubr.msk.bf16.gmra.mrb[12].mxu0 %vm175_vm1, %v423_v45 }
  0x42   : > { %2377 = vmatprep.mubr.msk.bf16.mxu0 %vm175_vm1, %v408_v46  ;;  %2402 = vmatpush3.bf16.msra.mxu1 %v2639_v63 }
  0x43   : > { %2403 = vmatprep.subr.bf16.mxu1 %v2640_v0 }
  0x46   : > { %2404 = vmatpush3.bf16.msra.mxu1 %v2640_v0 }
  0x47   : > { %2405 = vmatprep.subr.bf16.mxu1 %v2641_v1 }
  0x49   : > { %2378 = vmatmul.mubr.msk.bf16.vlgmr.msra.gmra.mrb[0].mxu0 %vm175_vm1, %v409_v49 }
  0x4a   : > { %2381 = vmatprep.mubr.msk.bf16.mxu0 %vm175_vm1, %v410_v50  ;;  %2406 = vmatpush3.bf16.msra.mxu1 %v2641_v1 }
  0x4b   : > { %2407 = vmatprep.subr.bf16.mxu1 %v2642_v2  ;;  %2442 = vmatpush3.bf16.msra.mxu0 %v2651_v5 }
  0x4c   : > { %2443 = vmatprep.subr.bf16.mxu0 %v2652_v6 }
  0x4e   : > { %2408 = vmatpush3.bf16.msra.mxu1 %v2642_v2 }
  0x4f   : > { %2417 = vmatprep.subr.bf16.mxu1 %v3029_v3  ;;  %2444 = vmatpush3.bf16.msra.mxu0 %v2652_v6 }
  0x51   : > { %2382 = vmatmul.mubr.msk.bf16.gmra.mrb[4].mxu0 %vm175_vm1, %v411_v53 }
  0x52   : > { %2385 = vmatprep.mubr.msk.bf16.mxu0 %vm175_vm1, %v412_v54 }
  0x59   : > { %2386 = vmatmul.mubr.msk.bf16.gmra.mrb[8].mxu0 %vm175_vm1, %v413_v57 }
  0x5a   : > { %2389 = vmatprep.mubr.msk.bf16.mxu0 %vm175_vm1, %v414_v58 }
  0x61   : > { %2390 = vmatmul.mubr.msk.bf16.gmra.mrb[12].mxu0 %vm175_vm1, %v415_v60 }
 0x11c   : > { %v2379_v8 = vpop.f32.mrb[0].mxu0 }
 0x11d   : > { %v690_v9 = vadd.f32 %v2379_v8, %v3041_v7  ;;  %v620_v10 = vpop.f32.mrb[1].mxu0  ;;  %v2644_v8 = vld [vmem:[%s3357_s1 + $0x88] sm:$0xff]  }
 0x11e   : > { %v688_v11 = vadd.f32 %v3041_v7, %v620_v10  ;;  %v2380_v12 = vpop.f32.mrb[2].mxu0 }
 0x11f   : > { %vm706_vm10 = vcmp.ge.f32.partialorder %v690_v9, 0.0  ;;  %v722_v13 = vmul.f32 0.1, %v690_v9  ;;  %v691_v14 = vadd.f32 %v2380_v12, %v3041_v7  ;;  %v623_v15 = vpop.f32.mrb[3].mxu0 }
 0x120   : > { %vm704_vm11 = vcmp.ge.f32.partialorder %v688_v11, 0.0  ;;  %v720_v16 = vmul.f32 0.1, %v688_v11  ;;  %v689_v17 = vadd.f32 %v3041_v7, %v623_v15 }
 0x121   : > { %v738_v18 = vsel %vm706_vm10, %v690_v9, %v722_v13  ;;  %vm707_vm12 = vcmp.ge.f32.partialorder %v691_v14, 0.0  ;;  %v723_v20 = vmul.f32 0.1, %v691_v14 }
 0x122   : > { %754 = vst [vmem:[#allocation3 + $0x18] sm:$0xff] %v738_v18  ;;  %v736_v21 = vsel %vm704_vm11, %v688_v11, %v720_v16  ;;  %vm705_vm13 = vcmp.ge.f32.partialorder %v689_v17, 0.0  ;;  %v721_v22 = vmul.f32 0.1, %v689_v17  ;;  %v2645_v18 = vld [vmem:[%s3357_s1 + $0x90] sm:$0xff]  }
 0x123   : > { %752 = vst [vmem:[#allocation3 + $0x8] sm:$0xff] %v736_v21  ;;  %v739_v23 = vsel %vm707_vm12, %v691_v14, %v723_v20 }
 0x124   : > { %755 = vst [vmem:[#allocation3 + $0x20] sm:$0xff] %v739_v23  ;;  %v737_v24 = vsel %vm705_vm13, %v689_v17, %v721_v22  ;;  %v2383_v25 = vpop.f32.mrb[4].mxu0  ;;  %v3067_v22 = vadd.s32 8, %v2881_v19 }
 0x125   : > { %753 = vst [vmem:[#allocation3 + $0x10] sm:$0xff] %v737_v24  ;;  %v694_v26 = vadd.f32 %v2383_v25, %v3041_v7  ;;  %v636_v27 = vpop.f32.mrb[5].mxu0 }
 0x126   : > { %v692_v28 = vadd.f32 %v3041_v7, %v636_v27  ;;  %v2384_v29 = vpop.f32.mrb[6].mxu0  ;;  %v800_v27 = vand.u32 7, %v2881_v19 }
 0x127   : > { %vm710_vm14 = vcmp.ge.f32.partialorder %v694_v26, 0.0  ;;  %v726_v30 = vmul.f32 0.1, %v694_v26  ;;  %v695_v31 = vadd.f32 %v2384_v29, %v3041_v7  ;;  %v639_v32 = vpop.f32.mrb[7].mxu0  ;;  %v2647_v29 = vld [vmem:[%s3357_s1 + $0xa0] sm:$0xff]  }
 0x128   : > { %vm708_vm15 = vcmp.ge.f32.partialorder %v692_v28, 0.0  ;;  %v724_v34 = vmul.f32 0.1, %v692_v28  ;;  %v693_v35 = vadd.f32 %v3041_v7, %v639_v32  ;;  %vm2246_vm11 = vcmp.ne.s32.totalorder %v800_v27, 0 }
 0x129   : > { %v742_v36 = vsel %vm710_vm14, %v694_v26, %v726_v30  ;;  %vm711_vm0 = vcmp.ge.f32.partialorder %v695_v31, 0.0  ;;  %v727_v39 = vmul.f32 0.1, %v695_v31  ;;  %v2646_v26 = vld [vmem:[%s3357_s1 + $0x98] sm:$0xff]  }
 0x12a   : > { %758 = vst [vmem:[#allocation3 + $0x38] sm:$0xff] %v742_v36  ;;  %v740_v40 = vsel %vm708_vm15, %v692_v28, %v724_v34  ;;  %vm709_vm1 = vcmp.ge.f32.partialorder %v693_v35, 0.0  ;;  %v725_v41 = vmul.f32 0.1, %v693_v35  ;;  %v801_v28 = vand.u32 7, %v3067_v22  ;;  %v2648_v36 = vld [vmem:[%s3357_s1 + $0xa8] sm:$0xff]  }
 0x12b   : > { %756 = vst [vmem:[#allocation3 + $0x28] sm:$0xff] %v740_v40  ;;  %v743_v42 = vsel %vm711_vm0, %v695_v31, %v727_v39  ;;  %v787_v43 = vld [vmem:[#allocation3 + $0x18] ss:$2 sm:$0xff]  ;;  %v2649_v40 = vld [vmem:[%s3357_s1 + $0xb0] sm:$0xff]  }
 0x12c   : > { %759 = vst [vmem:[#allocation3 + $0x40] sm:$0xff] %v743_v42  ;;  %v741_v44 = vsel %vm709_vm1, %v693_v35, %v725_v41  ;;  %v2387_v45 = vpop.f32.mrb[8].mxu0  ;;  %v785_v46 = vld [vmem:[#allocation3 + $0x8] ss:$2 sm:$0xff]  ;;  %vm2245_vm10 = vcmp.ne.s32.totalorder %v801_v28, 0  ;;  %v3084_v41 = vadd.s32 24, %v2881_v19 }
 0x12d   : > { %757 = vst [vmem:[#allocation3 + $0x30] sm:$0xff] %v741_v44  ;;  %v698_v47 = vadd.f32 %v2387_v45, %v3041_v7  ;;  %v652_v48 = vpop.f32.mrb[9].mxu0  ;;  %v878_v49 = vpack.c.bf16 %v787_v43, %v785_v46  ;;  %v769_v31 = vld [vmem:[#allocation3 + $0x7] ss:$2 sm:$0xff]  ;;  %v771_v32 = vld [vmem:[#allocation3 + $0x17] ss:$2 sm:$0xff]  ;;  %vm2059_vm12 = vmpackc.low %vm2245_vm10, %vm2246_vm11 }
 0x12e   : > { %v696_v50 = vadd.f32 %v3041_v7, %v652_v48  ;;  %v2388_v51 = vpop.f32.mrb[10].mxu0  ;;  %v2060_v39 = vpack.c.bf16 %v771_v32, %v769_v31  ;;  %v312_v42 = vadd.s32 40, %v2881_v19  ;;  %v2650_v43 = vld [vmem:[%s3357_s1 + $0xb8] sm:$0xff]   ;;  %v802_v44 = vand.u32 7, %v2909_v33 }
 0x12f   : > { %vm714_vm2 = vcmp.ge.f32.partialorder %v698_v47, 0.0  ;;  %v730_v52 = vmul.f32 0.1, %v698_v47  ;;  %v699_v53 = vadd.f32 %v2388_v51, %v3041_v7  ;;  %v655_v54 = vpop.f32.mrb[11].mxu0  ;;  %2409 = vmatprep.mubr.bf16.mxu1 %v878_v49  ;;  %v803_v45 = vand.u32 7, %v3084_v41 }
 0x130   : > { %vm712_vm3 = vcmp.ge.f32.partialorder %v696_v50, 0.0  ;;  %v728_v55 = vmul.f32 0.1, %v696_v50  ;;  %v697_v56 = vadd.f32 %v3041_v7, %v655_v54  ;;  %v804_v46 = vand.u32 7, %v2917_v37 }
 0x131   : > { %v746_v57 = vsel %vm714_vm2, %v698_v47, %v730_v52  ;;  %vm715_vm4 = vcmp.ge.f32.partialorder %v699_v53, 0.0  ;;  %v731_v58 = vmul.f32 0.1, %v699_v53  ;;  %v805_v47 = vand.u32 7, %v312_v42 }
 0x132   : > { %762 = vst [vmem:[#allocation3 + $0x58] sm:$0xff] %v746_v57  ;;  %v744_v59 = vsel %vm712_vm3, %v696_v50, %v728_v55  ;;  %vm713_vm5 = vcmp.ge.f32.partialorder %v697_v56, 0.0  ;;  %v729_v60 = vmul.f32 0.1, %v697_v56  ;;  %vm3093_vm13 = vcmp.ne.s32.totalorder %v803_v45, 0 }
 0x133   : > { %760 = vst [vmem:[#allocation3 + $0x48] sm:$0xff] %v744_v59  ;;  %v747_v61 = vsel %vm715_vm4, %v699_v53, %v731_v58  ;;  %v791_v62 = vld [vmem:[#allocation3 + $0x38] ss:$2 sm:$0xff]  ;;  %vm3097_vm14 = vcmp.ne.s32.totalorder %v802_v44, 0  ;;  %v314_v50 = vadd.s32 56, %v2881_v19  ;;  %vm2249_vm15 = vcmp.ne.s32.totalorder %v805_v47, 0 }
 0x134   : > { %763 = vst [vmem:[#allocation3 + $0x60] sm:$0xff] %v747_v61  ;;  %v745_v63 = vsel %vm713_vm5, %v697_v56, %v729_v60  ;;  %v2391_v0 = vpop.f32.mrb[12].mxu0  ;;  %v789_v1 = vld [vmem:[#allocation3 + $0x28] ss:$2 sm:$0xff]  ;;  %v773_v51 = vld [vmem:[#allocation3 + $0x27] ss:$2 sm:$0xff]  ;;  %vm2064_vm1 = vmpackc.low %vm3093_vm13, %vm3097_vm14 }
 0x135   : > { %761 = vst [vmem:[#allocation3 + $0x50] sm:$0xff] %v745_v63  ;;  %v702_v2 = vadd.f32 %v2391_v0, %v3041_v7  ;;  %v668_v5 = vpop.f32.mrb[13].mxu0  ;;  %v879_v6 = vpack.c.bf16 %v791_v62, %v789_v1  ;;  %v775_v52 = vld [vmem:[#allocation3 + $0x37] ss:$2 sm:$0xff]  ;;  %vm2250_vm0 = vcmp.ne.s32.totalorder %v804_v46, 0  ;;  %v806_v55 = vand.u32 7, %v2920_v38 }
 0x136   : > { %v700_v9 = vadd.f32 %v3041_v7, %v668_v5  ;;  %v2392_v10 = vpop.f32.mrb[14].mxu0  ;;  %v2065_v37 = vpack.c.bf16 %v775_v52, %v773_v51  ;;  %vm2069_vm2 = vmpackc.low %vm2249_vm15, %vm2250_vm0  ;;  %v807_v56 = vand.u32 7, %v314_v50  ;;  %v2653_v61 = vld [vmem:[%s3357_s1 + $0x150] sm:$0xff]   ;;  %v2655_v38 = vld [vmem:[%s3357_s1 + $0x160] sm:$0xff]   ;;  %v1165_v50 = vand.u32 3, %v2881_v19 }
 0x137   : > { %vm718_vm6 = vcmp.ge.f32.partialorder %v702_v2, 0.0  ;;  %v734_v11 = vmul.f32 0.1, %v702_v2  ;;  %v703_v12 = vadd.f32 %v2392_v10, %v3041_v7  ;;  %v671_v13 = vpop.f32.mrb[15].mxu0  ;;  %2410 = vmatmul.mubr.bf16.vlgmr.msra.gmra.mrb[0].mxu1 %v879_v6  ;;  %vm2252_vm4 = vcmp.ne.s32.totalorder %v806_v55, 0  ;;  %2445 = vmatprep.subr.bf16.mxu0 %v2653_v61  ;;  %v2656_v62 = vld [vmem:[%s3357_s1 + $0x168] sm:$0xff]  }
 0x138   : > { %vm716_vm7 = vcmp.ge.f32.partialorder %v700_v9, 0.0  ;;  %v732_v14 = vmul.f32 0.1, %v700_v9  ;;  %v701_v15 = vadd.f32 %v3041_v7, %v671_v13  ;;  %2418 = vmatpush3.bf16.msra.mxu1 %v3029_v3  ;;  %vm2251_vm3 = vcmp.ne.s32.totalorder %v807_v56, 0  ;;  %2446 = vmatpush3.bf16.msra.mxu0 %v2653_v61  ;;  %v2657_v63 = vld [vmem:[%s3357_s1 + $0x170] sm:$0xff]   ;;  %v2658_v0 = vld [vmem:[%s3357_s1 + $0x178] sm:$0xff]  }
 0x139   : > { %v750_v16 = vsel %vm718_vm6, %v702_v2, %v734_v11  ;;  %vm719_vm8 = vcmp.ge.f32.partialorder %v703_v12, 0.0  ;;  %v735_v17 = vmul.f32 0.1, %v703_v12  ;;  %2419 = vmatprep.subr.bf16.mxu1 %v2644_v8  ;;  %vm2074_vm5 = vmpackc.low %vm2251_vm3, %vm2252_vm4  ;;  %v3129_v1 = vld [vmem:[%s3357_s1 + $0x100] sm:$0xff]   ;;  %v2668_v5 = vld [vmem:[%s3357_s1 + $0x1c8] sm:$0xff]   ;;  %v1166_v51 = vand.u32 3, %v3067_v22 }
 0x13a   : > { %766 = vst [vmem:[#allocation3 + $0x78] sm:$0xff] %v750_v16  ;;  %v748_v20 = vsel %vm716_vm7, %v700_v9, %v732_v14  ;;  %vm717_vm9 = vcmp.ge.f32.partialorder %v701_v15, 0.0  ;;  %v733_v21 = vmul.f32 0.1, %v701_v15  ;;  %v2667_v2 = vld [vmem:[%s3357_s1 + $0x1c0] sm:$0xff]   ;;  %v3138_v6 = vld [vmem:[#allocation3] sm:$0xff] }
 0x13b   : > { %764 = vst [vmem:[#allocation3 + $0x68] sm:$0xff] %v748_v20  ;;  %v751_v23 = vsel %vm719_vm8, %v703_v12, %v735_v17  ;;  %v795_v7 = vld [vmem:[#allocation3 + $0x58] ss:$2 sm:$0xff]  ;;  %v2670_v9 = vld [vmem:[%s3357_s1 + $0x1d8] sm:$0xff]   ;;  %v2077_v10 = vld [vmem:[%s3358_s2 + $0x1] ss:$0 sm:$0xff] }
 0x13c   : > { %767 = vst [vmem:[#allocation3 + $0x80] sm:$0xff] %v751_v23  ;;  %v749_v3 = vsel %vm717_vm9, %v701_v15, %v733_v21  ;;  %2420 = vmatpush3.bf16.msra.mxu1 %v2644_v8  ;;  %v793_v24 = vld [vmem:[#allocation3 + $0x48] ss:$2 sm:$0xff]  ;;  %v777_v53 = vld [vmem:[#allocation3 + $0x47] ss:$2 sm:$0xff]  ;;  %vm2253_vm14 = vcmp.ne.s32.totalorder %v1166_v51, 0 }
 0x13d   : > { %765 = vst [vmem:[#allocation3 + $0x70] sm:$0xff] %v749_v3  ;;  %2421 = vmatprep.subr.bf16.mxu1 %v2645_v18  ;;  %v880_v25 = vpack.c.bf16 %v795_v7, %v793_v24  ;;  %v779_v54 = vld [vmem:[#allocation3 + $0x57] ss:$2 sm:$0xff]  ;;  %v2669_v8 = vld [vmem:[%s3357_s1 + $0x1d0] sm:$0xff]   ;;  %vm2254_vm15 = vcmp.ne.s32.totalorder %v1165_v50, 0  ;;  %vm2765_vm4 = vmmov 0  }
 0x13e   : > { %v2070_v57 = vpack.c.bf16 %v779_v54, %v777_v53  ;;  %vm2128_vm0 = vmpackc.low %vm2253_vm14, %vm2254_vm15  ;;  %v2660_v56 = vld [vmem:[%s3357_s1 + $0x108] sm:$0xff]   ;;  %v2689_v50 = vld [vmem:[%s3357_s1 + $0x218] sm:$0xff]  }
 0x13f   : > { %2413 = vmatprep.mubr.bf16.mxu1 %v880_v25  ;;  %v2664_v61 = vld [vmem:[%s3357_s1 + $0x128] sm:$0xff]   ;;  %v2690_v51 = vld [vmem:[%s3357_s1 + $0x258] sm:$0xff]  }
 0x140   : > { %2422 = vmatpush3.bf16.msra.mxu1 %v2645_v18 }
 0x141   : > { %2423 = vmatprep.subr.bf16.mxu1 %v2646_v26 }
 0x143   : > { %v799_v30 = vld [vmem:[#allocation3 + $0x78] ss:$2 sm:$0xff] }
 0x144   : > { %2424 = vmatpush3.bf16.msra.mxu1 %v2646_v26  ;;  %v797_v34 = vld [vmem:[#allocation3 + $0x68] ss:$2 sm:$0xff]  ;;  %v781_v58 = vld [vmem:[#allocation3 + $0x67] ss:$2 sm:$0xff]  ;;  %v783_v59 = vld [vmem:[#allocation3 + $0x77] ss:$2 sm:$0xff] }
 0x145   : > { %2425 = vmatprep.subr.bf16.mxu1 %v2647_v29  ;;  %v881_v35 = vpack.c.bf16 %v799_v30, %v797_v34  ;;  %v2075_v60 = vpack.c.bf16 %v783_v59, %v781_v58  ;;  %v2661_v58 = vld [vmem:[%s3357_s1 + $0x110] sm:$0xff]   ;;  %v2662_v59 = vld [vmem:[%s3357_s1 + $0x118] sm:$0xff]  }
 0x147   : > { %2414 = vmatmul.mubr.bf16.gmra.mrb[4].mxu1 %v881_v35 }
 0x148   : > { %2426 = vmatpush3.bf16.msra.mxu1 %v2647_v29  ;;  %2433 = vmatprep.mubr.msk.bf16.mxu1 %vm2059_vm12, %v2060_v39 }
 0x149   : > { %2427 = vmatprep.subr.bf16.mxu1 %v2648_v36 }
 0x14c   : > { %2428 = vmatpush3.bf16.msra.mxu1 %v2648_v36 }
 0x14d   : > { %2429 = vmatprep.subr.bf16.mxu1 %v2649_v40 }
 0x150   : > { %2430 = vmatpush3.bf16.msra.mxu1 %v2649_v40 }
 0x151   : > { %2431 = vmatprep.subr.bf16.mxu1 %v2650_v43 }
 0x154   : > { %2432 = vmatpush3.bf16.msra.mxu1 %v2650_v43 }
 0x155   : > { %2481 = vmatprep.subr.bf16.mxu1 %v2764_v4  ;;  %v2654_v4 = vld [vmem:[%s3357_s1 + $0x158] sm:$0xff]  }
 0x156   : > { %2447 = vmatprep.subr.bf16.mxu0 %v2654_v4 }
 0x157   : > { %2434 = vmatmul.mubr.msk.bf16.vlgmr.msra.gmra.mrb[0].mxu1 %vm2064_vm1, %v2065_v37  ;;  %2448 = vmatpush3.bf16.msra.mxu0 %v2654_v4  ;;  %v2665_v4 = vld [vmem:[%s3357_s1 + $0x130] sm:$0xff]  }
 0x158   : > { %2437 = vmatprep.mubr.msk.bf16.mxu1 %vm2069_vm2, %v2070_v57  ;;  %2449 = vmatprep.subr.bf16.mxu0 %v2655_v38 }
 0x159   : > { %2482 = vmatpush3.bf16.msra.mxu1 %v2667_v2 }
 0x15a   : > { %2483 = vmatprep.subr.bf16.mxu1 %v3138_v6 }
 0x15b   : > { %2450 = vmatpush3.bf16.msra.mxu0 %v2655_v38  ;;  %v2666_v38 = vld [vmem:[%s3357_s1 + $0x138] sm:$0xff]  }
 0x15c   : > { %2451 = vmatprep.subr.bf16.mxu0 %v2656_v62 }
 0x15d   : > { %2484 = vmatpush3.bf16.msra.mxu1 %v2668_v5  ;;  %v2671_v5 = vld [vmem:[%s3357_s1 + $0x1e0] sm:$0xff]  }
 0x15e   : > { %2485 = vmatprep.subr.bf16.mxu1 %v3138_v6 }
 0x15f   : > { %2438 = vmatmul.mubr.msk.bf16.gmra.mrb[4].mxu1 %vm2074_vm5, %v2075_v60  ;;  %2452 = vmatpush3.bf16.msra.mxu0 %v2656_v62  ;;  %v2663_v60 = vld [vmem:[%s3357_s1 + $0x120] sm:$0xff]   ;;  %v1167_v62 = vand.u32 3, %v2909_v33  ;;  %v2672_v33 = vld [vmem:[%s3357_s1 + $0x1e8] sm:$0xff]  }
 0x160   : > { %2453 = vmatprep.subr.bf16.mxu0 %v2657_v63  ;;  %2497 = vmatprep.mubr.msk.bf16.mxu1 %vm2765_vm4, %v3138_v6 }
 0x161   : > { %2486 = vmatpush3.bf16.msra.mxu1 %v2669_v8  ;;  %vm2256_vm2 = vcmp.ne.s32.totalorder %v1167_v62, 0  ;;  %v2674_v8 = vld [vmem:[%s3357_s1 + $0x1f8] sm:$0xff]  }
 0x162   : > { %2487 = vmatprep.subr.bf16.mxu1 %v3138_v6 }
 0x163   : > { %2454 = vmatpush3.bf16.msra.mxu0 %v2657_v63  ;;  %v1168_v63 = vand.u32 3, %v3084_v41  ;;  %v2673_v41 = vld [vmem:[%s3357_s1 + $0x1f0] sm:$0xff]  }
 0x164   : > { %2455 = vmatprep.subr.bf16.mxu0 %v2658_v0 }
 0x165   : > { %2488 = vmatpush3.bf16.msra.mxu1 %v2670_v9  ;;  %vm2255_vm1 = vcmp.ne.s32.totalorder %v1168_v63, 0  ;;  %v2136_v9 = vld [vmem:[%s3358_s2 + $0x2] ss:$0 sm:$0xff]  ;;  %v2190_v63 = vld [vmem:[%s3358_s2 + $0x3] ss:$0 sm:$0xff] }
 0x166   : > { %2489 = vmatprep.subr.bf16.mxu1 %v3138_v6  ;;  %vm2133_vm3 = vmpackc.low %vm2255_vm1, %vm2256_vm2 }
 0x167   : > { %2456 = vmatpush3.bf16.msra.mxu0 %v2658_v0 }
 0x168   : > { %2461 = vmatprep.subr.bf16.mxu0 %v3129_v1 }
 0x169   : > { %2490 = vmatpush3.bf16.msra.mxu1 %v2671_v5 }
 0x16a   : > { %2491 = vmatprep.subr.bf16.mxu1 %v3138_v6 }
 0x16d   : > { %2492 = vmatpush3.bf16.msra.mxu1 %v2672_v33 }
 0x16e   : > { %2493 = vmatprep.subr.bf16.mxu1 %v3138_v6 }
 0x171   : > { %2494 = vmatpush3.bf16.msra.mxu1 %v2673_v41 }
 0x172   : > { %2495 = vmatprep.subr.bf16.mxu1 %v3138_v6 }
 0x175   : > { %2496 = vmatpush3.bf16.msra.mxu1 %v2674_v8 }
 0x176   : > { %2501 = vmatprep.subr.bf16.mxu1 %v3138_v6 }
 0x22a   : > { %v2435_v11 = vpop.f32.mrb[0].mxu1 }
 0x22b   : > { %v1115_v12 = vadd.f32 %v2435_v11, %v2077_v10  ;;  %v1077_v13 = vpop.f32.mrb[1].mxu1 }
 0x22c   : > { %v1113_v14 = vadd.f32 %v2077_v10, %v1077_v13  ;;  %v2436_v15 = vpop.f32.mrb[2].mxu1 }
 0x22d   : > { %vm1123_vm6 = vcmp.ge.f32.partialorder %v1115_v12, 0.0  ;;  %v1131_v16 = vmul.f32 0.1, %v1115_v12  ;;  %v1116_v17 = vadd.f32 %v2436_v15, %v2077_v10  ;;  %v1080_v18 = vpop.f32.mrb[3].mxu1 }
 0x22e   : > { %vm1121_vm7 = vcmp.ge.f32.partialorder %v1113_v14, 0.0  ;;  %v1129_v20 = vmul.f32 0.1, %v1113_v14  ;;  %v1114_v21 = vadd.f32 %v2077_v10, %v1080_v18 }
 0x22f   : > { %v1139_v23 = vsel %vm1123_vm6, %v1115_v12, %v1131_v16  ;;  %vm1124_vm8 = vcmp.ge.f32.partialorder %v1116_v17, 0.0  ;;  %v1132_v7 = vmul.f32 0.1, %v1116_v17 }
 0x230   : > { %1147 = vst [vmem:[#allocation3 + $0x18] sm:$0xff] %v1139_v23  ;;  %v1137_v3 = vsel %vm1121_vm7, %v1113_v14, %v1129_v20  ;;  %vm1122_vm9 = vcmp.ge.f32.partialorder %v1114_v21, 0.0  ;;  %v1130_v24 = vmul.f32 0.1, %v1114_v21 }
 0x231   : > { %1145 = vst [vmem:[#allocation3 + $0x8] sm:$0xff] %v1137_v3  ;;  %v1140_v25 = vsel %vm1124_vm8, %v1116_v17, %v1132_v7 }
 0x232   : > { %1148 = vst [vmem:[#allocation3 + $0x20] sm:$0xff] %v1140_v25  ;;  %v1138_v26 = vsel %vm1122_vm9, %v1114_v21, %v1130_v24  ;;  %v2439_v27 = vpop.f32.mrb[4].mxu1 }
 0x233   : > { %1146 = vst [vmem:[#allocation3 + $0x10] sm:$0xff] %v1138_v26  ;;  %v1119_v28 = vadd.f32 %v2439_v27, %v2077_v10  ;;  %v1093_v29 = vpop.f32.mrb[5].mxu1 }
 0x234   : > { %v1117_v30 = vadd.f32 %v2077_v10, %v1093_v29  ;;  %v2440_v31 = vpop.f32.mrb[6].mxu1 }
 0x235   : > { %vm1127_vm10 = vcmp.ge.f32.partialorder %v1119_v28, 0.0  ;;  %v1135_v32 = vmul.f32 0.1, %v1119_v28  ;;  %v1120_v34 = vadd.f32 %v2440_v31, %v2077_v10  ;;  %v1096_v35 = vpop.f32.mrb[7].mxu1  ;;  %v2677_v31 = vld [vmem:[%s3357_s1 + $0x190] sm:$0xff]  }
 0x236   : > { %vm1125_vm11 = vcmp.ge.f32.partialorder %v1117_v30, 0.0  ;;  %v1133_v36 = vmul.f32 0.1, %v1117_v30  ;;  %v1118_v39 = vadd.f32 %v2077_v10, %v1096_v35  ;;  %v2680_v35 = vld [vmem:[%s3357_s1 + $0x1a8] sm:$0xff]  }
 0x237   : > { %v1143_v40 = vsel %vm1127_vm10, %v1119_v28, %v1135_v32  ;;  %vm1128_vm12 = vcmp.ge.f32.partialorder %v1120_v34, 0.0  ;;  %v1136_v42 = vmul.f32 0.1, %v1120_v34  ;;  %v2675_v28 = vld [vmem:[%s3357_s1 + $0x180] sm:$0xff]   ;;  %v2678_v32 = vld [vmem:[%s3357_s1 + $0x198] sm:$0xff]  }
 0x238   : > { %1151 = vst [vmem:[#allocation3 + $0x38] sm:$0xff] %v1143_v40  ;;  %v1141_v43 = vsel %vm1125_vm11, %v1117_v30, %v1133_v36  ;;  %vm1126_vm13 = vcmp.ge.f32.partialorder %v1118_v39, 0.0  ;;  %v1134_v44 = vmul.f32 0.1, %v1118_v39  ;;  %v2676_v30 = vld [vmem:[%s3357_s1 + $0x188] sm:$0xff]   ;;  %v2681_v36 = vld [vmem:[%s3357_s1 + $0x1b0] sm:$0xff]  }
 0x239   : > { %1149 = vst [vmem:[#allocation3 + $0x28] sm:$0xff] %v1141_v43  ;;  %v1144_v45 = vsel %vm1128_vm12, %v1120_v34, %v1136_v42  ;;  %v1160_v46 = vld [vmem:[#allocation3 + $0x18] ss:$2 sm:$0xff]  ;;  %v1447_v40 = vand.u32 1, %v3067_v22  ;;  %v2682_v42 = vld [vmem:[%s3357_s1 + $0x1b8] sm:$0xff]  }
 0x23a   : > { %1152 = vst [vmem:[#allocation3 + $0x40] sm:$0xff] %v1144_v45  ;;  %v1142_v47 = vsel %vm1126_vm13, %v1118_v39, %v1134_v44  ;;  %v1158_v48 = vld [vmem:[#allocation3 + $0x8] ss:$2 sm:$0xff]  ;;  %v1153_v53 = vld [vmem:[#allocation3 + $0x7] ss:$2 sm:$0xff]  ;;  %v2679_v34 = vld [vmem:[%s3357_s1 + $0x1a0] sm:$0xff]  }
 0x23b   : > { %1150 = vst [vmem:[#allocation3 + $0x30] sm:$0xff] %v1142_v47  ;;  %v1221_v49 = vpack.c.bf16 %v1160_v46, %v1158_v48  ;;  %v1154_v54 = vld [vmem:[#allocation3 + $0x17] ss:$2 sm:$0xff]  ;;  %v1446_v39 = vand.u32 1, %v2881_v19  ;;  %vm2257_vm9 = vcmp.ne.s32.totalorder %v1447_v40, 0  ;;  %v2687_v48 = vld [vmem:[%s3357_s1 + $0x210] sm:$0xff]  }
 0x23c   : > { %v2129_v57 = vpack.c.bf16 %v1154_v54, %v1153_v53  ;;  %v2683_v19 = vld [vmem:[%s3357_s1 + $0x200] sm:$0xff]   ;;  %v2685_v46 = vld [vmem:[%s3357_s1 + $0x208] sm:$0xff]  }
 0x23d   : > { %2457 = vmatprep.mubr.bf16.mxu0 %v1221_v49  ;;  %vm2258_vm10 = vcmp.ne.s32.totalorder %v1446_v39, 0  ;;  %v2684_v22 = vld [vmem:[%s3357_s1 + $0x240] sm:$0xff]   ;;  %v2686_v47 = vld [vmem:[%s3357_s1 + $0x248] sm:$0xff]   ;;  %v2688_v49 = vld [vmem:[%s3357_s1 + $0x250] sm:$0xff]  }
 0x23e   : > { %vm2187_vm11 = vmpackc.low %vm2257_vm9, %vm2258_vm10  ;;  %v2692_v53 = vld [vmem:[%s3357_s1 + $0x260] sm:$0xff]   ;;  %v2693_v54 = vld [vmem:[%s3357_s1 + $0x228] sm:$0xff]  }
 0x241   : > { %v1164_v52 = vld [vmem:[#allocation3 + $0x38] ss:$2 sm:$0xff] }
 0x242   : > { %v1162_v37 = vld [vmem:[#allocation3 + $0x28] ss:$2 sm:$0xff]  ;;  %v1155_v0 = vld [vmem:[#allocation3 + $0x27] ss:$2 sm:$0xff] }
 0x243   : > { %v1222_v55 = vpack.c.bf16 %v1164_v52, %v1162_v37  ;;  %v2691_v52 = vld [vmem:[%s3357_s1 + $0x220] sm:$0xff]   ;;  %v2694_v37 = vld [vmem:[%s3357_s1 + $0x268] sm:$0xff]  }
 0x245   : > { %2458 = vmatmul.mubr.bf16.vlgmr.msra.gmra.mrb[16].mxu0 %v1222_v55  ;;  %v2695_v55 = vld [vmem:[%s3357_s1 + $0x230] sm:$0xff]  }
 0x246   : > { %2462 = vmatpush3.bf16.msra.mxu0 %v3129_v1  ;;  %2477 = vmatprep.mubr.msk.bf16.mxu0 %vm2128_vm0, %v2129_v57  ;;  %v1156_v1 = vld [vmem:[#allocation3 + $0x37] ss:$2 sm:$0xff] }
 0x247   : > { %2463 = vmatprep.subr.bf16.mxu0 %v2660_v56  ;;  %v2134_v2 = vpack.c.bf16 %v1156_v1, %v1155_v0  ;;  %v2697_v57 = vld [vmem:[%s3357_s1 + $0x238] sm:$0xff]  }
 0x24a   : > { %2464 = vmatpush3.bf16.msra.mxu0 %v2660_v56  ;;  %v2696_v56 = vld [vmem:[%s3357_s1 + $0x270] sm:$0xff]  }
 0x24b   : > { %2465 = vmatprep.subr.bf16.mxu0 %v2661_v58 }
 0x24e   : > { %2466 = vmatpush3.bf16.msra.mxu0 %v2661_v58  ;;  %v2698_v58 = vld [vmem:[%s3357_s1 + $0x278] sm:$0xff]  }
 0x24f   : > { %2467 = vmatprep.subr.bf16.mxu0 %v2662_v59 }
 0x252   : > { %2468 = vmatpush3.bf16.msra.mxu0 %v2662_v59  ;;  %v2766_v59 = vmov 0  }
 0x253   : > { %2469 = vmatprep.subr.bf16.mxu0 %v2663_v60 }
 0x256   : > { %2470 = vmatpush3.bf16.msra.mxu0 %v2663_v60 }
 0x257   : > { %2471 = vmatprep.subr.bf16.mxu0 %v2664_v61 }
 0x25a   : > { %2472 = vmatpush3.bf16.msra.mxu0 %v2664_v61 }
 0x25b   : > { %2473 = vmatprep.subr.bf16.mxu0 %v2665_v4 }
 0x25e   : > { %2474 = vmatpush3.bf16.msra.mxu0 %v2665_v4 }
 0x25f   : > { %2475 = vmatprep.subr.bf16.mxu0 %v2666_v38 }
 0x262   : > { %2476 = vmatpush3.bf16.msra.mxu0 %v2666_v38 }
 0x263   : > { %2521 = vmatprep.subr.bf16.mxu0 %v3138_v6 }
 0x265   : > { %2478 = vmatmul.mubr.msk.bf16.vlgmr.msra.gmra.mrb[16].mxu0 %vm2133_vm3, %v2134_v2 }
 0x266   : > { %2537 = vmatprep.mubr.msk.bf16.mxu0 %vm2765_vm4, %v3138_v6  ;;  %2522 = vmatpush3.bf16.msra.mxu0 %v2684_v22 }
 0x267   : > { %2523 = vmatprep.subr.bf16.mxu0 %v3138_v6 }
 0x26a   : > { %2524 = vmatpush3.bf16.msra.mxu0 %v2686_v47 }
 0x26b   : > { %2525 = vmatprep.subr.bf16.mxu0 %v3138_v6 }
 0x26e   : > { %2526 = vmatpush3.bf16.msra.mxu0 %v2688_v49 }
 0x26f   : > { %2527 = vmatprep.subr.bf16.mxu0 %v3138_v6 }
 0x272   : > { %2528 = vmatpush3.bf16.msra.mxu0 %v2690_v51 }
 0x273   : > { %2529 = vmatprep.subr.bf16.mxu0 %v3138_v6 }
 0x276   : > { %2530 = vmatpush3.bf16.msra.mxu0 %v2692_v53 }
 0x277   : > { %2531 = vmatprep.subr.bf16.mxu0 %v3138_v6 }
 0x27a   : > { %2532 = vmatpush3.bf16.msra.mxu0 %v2694_v37 }
 0x27b   : > { %2533 = vmatprep.subr.bf16.mxu0 %v3138_v6 }
 0x27e   : > { %2534 = vmatpush3.bf16.msra.mxu0 %v2696_v56 }
 0x27f   : > { %2535 = vmatprep.subr.bf16.mxu0 %v3138_v6 }
 0x282   : > { %2536 = vmatpush3.bf16.msra.mxu0 %v2698_v58 }
 0x338   : > { %v2479_v10 = vpop.f32.mrb[16].mxu0 }
 0x339   : > { %v1424_v11 = vadd.f32 %v2479_v10, %v2136_v9  ;;  %v1402_v12 = vpop.f32.mrb[17].mxu0 }
 0x33a   : > { %v1422_v13 = vadd.f32 %v2136_v9, %v1402_v12  ;;  %v2480_v14 = vpop.f32.mrb[18].mxu0 }
 0x33b   : > { %vm1428_vm5 = vcmp.ge.f32.partialorder %v1424_v11, 0.0  ;;  %v1432_v15 = vmul.f32 0.1, %v1424_v11  ;;  %v1425_v16 = vadd.f32 %v2480_v14, %v2136_v9  ;;  %v1405_v17 = vpop.f32.mrb[19].mxu0 }
 0x33c   : > { %vm1426_vm6 = vcmp.ge.f32.partialorder %v1422_v13, 0.0  ;;  %v1430_v18 = vmul.f32 0.1, %v1422_v13  ;;  %v1423_v20 = vadd.f32 %v2136_v9, %v1405_v17 }
 0x33d   : > { %v1436_v21 = vsel %vm1428_vm5, %v1424_v11, %v1432_v15  ;;  %vm1429_vm7 = vcmp.ge.f32.partialorder %v1425_v16, 0.0  ;;  %v1433_v23 = vmul.f32 0.1, %v1425_v16 }
 0x33e   : > { %1440 = vst [vmem:[#allocation3 + $0x18] sm:$0xff] %v1436_v21  ;;  %v1434_v7 = vsel %vm1426_vm6, %v1422_v13, %v1430_v18  ;;  %vm1427_vm8 = vcmp.ge.f32.partialorder %v1423_v20, 0.0  ;;  %v1431_v3 = vmul.f32 0.1, %v1423_v20 }
 0x33f   : > { %1438 = vst [vmem:[#allocation3 + $0x8] sm:$0xff] %v1434_v7  ;;  %v1437_v24 = vsel %vm1429_vm7, %v1425_v16, %v1433_v23 }
 0x340   : > { %1441 = vst [vmem:[#allocation3 + $0x20] sm:$0xff] %v1437_v24  ;;  %v1435_v25 = vsel %vm1427_vm8, %v1423_v20, %v1431_v3  ;;  %v2239_v20 = vld [vmem:[%s3358_s2 + $0x4] ss:$0 sm:$0xff] }
 0x341   : > { %1439 = vst [vmem:[#allocation3 + $0x10] sm:$0xff] %v1435_v25 }
 0x347   : > { %v1445_v26 = vld [vmem:[#allocation3 + $0x18] ss:$2 sm:$0xff] }
 0x348   : > { %v1444_v27 = vld [vmem:[#allocation3 + $0x8] ss:$2 sm:$0xff]  ;;  %v1442_v43 = vld [vmem:[#allocation3 + $0x7] ss:$2 sm:$0xff]  ;;  %v1443_v44 = vld [vmem:[#allocation3 + $0x17] ss:$2 sm:$0xff] }
 0x349   : > { %v1491_v29 = vpack.c.bf16 %v1445_v26, %v1444_v27  ;;  %v2188_v45 = vpack.c.bf16 %v1443_v44, %v1442_v43 }
 0x34b   : > { %2498 = vmatmul.mubr.bf16.vlgmr.msra.gmra.mrb[8].mxu1 %v1491_v29 }
 0x34c   : > { %2502 = vmatpush3.bf16.msra.mxu1 %v2675_v28  ;;  %2517 = vmatprep.mubr.msk.bf16.mxu1 %vm2765_vm4, %v3138_v6 }
 0x34d   : > { %2503 = vmatprep.subr.bf16.mxu1 %v3138_v6 }
 0x350   : > { %2504 = vmatpush3.bf16.msra.mxu1 %v2676_v30 }
 0x351   : > { %2505 = vmatprep.subr.bf16.mxu1 %v3138_v6 }
 0x354   : > { %2506 = vmatpush3.bf16.msra.mxu1 %v2677_v31 }
 0x355   : > { %2507 = vmatprep.subr.bf16.mxu1 %v3138_v6 }
 0x358   : > { %2508 = vmatpush3.bf16.msra.mxu1 %v2678_v32 }
 0x359   : > { %2509 = vmatprep.subr.bf16.mxu1 %v3138_v6 }
 0x35c   : > { %2510 = vmatpush3.bf16.msra.mxu1 %v2679_v34 }
 0x35d   : > { %2511 = vmatprep.subr.bf16.mxu1 %v3138_v6 }
 0x360   : > { %2512 = vmatpush3.bf16.msra.mxu1 %v2680_v35 }
 0x361   : > { %2513 = vmatprep.subr.bf16.mxu1 %v3138_v6 }
 0x364   : > { %2514 = vmatpush3.bf16.msra.mxu1 %v2681_v36 }
 0x365   : > { %2515 = vmatprep.subr.bf16.mxu1 %v3138_v6 }
 0x368   : > { %2516 = vmatpush3.bf16.msra.mxu1 %v2682_v42 }
 0x369   : > { %2541 = vmatprep.subr.bf16.mxu1 %v3138_v6 }
 0x36b   : > { %2518 = vmatmul.mubr.msk.bf16.vlgmr.msra.gmra.mrb[12].mxu1 %vm2187_vm11, %v2188_v45 }
 0x36c   : > { %2557 = vmatprep.mubr.msk.bf16.mxu1 %vm2765_vm4, %v3138_v6  ;;  %2542 = vmatpush3.bf16.msra.mxu1 %v2683_v19 }
 0x36d   : > { %2543 = vmatprep.subr.bf16.mxu1 %v3138_v6 }
 0x370   : > { %2544 = vmatpush3.bf16.msra.mxu1 %v2685_v46 }
 0x371   : > { %2545 = vmatprep.subr.bf16.mxu1 %v3138_v6 }
 0x374   : > { %2546 = vmatpush3.bf16.msra.mxu1 %v2687_v48 }
 0x375   : > { %2547 = vmatprep.subr.bf16.mxu1 %v3138_v6 }
 0x378   : > { %2548 = vmatpush3.bf16.msra.mxu1 %v2689_v50 }
 0x379   : > { %2549 = vmatprep.subr.bf16.mxu1 %v3138_v6 }
 0x37c   : > { %2550 = vmatpush3.bf16.msra.mxu1 %v2691_v52 }
 0x37d   : > { %2551 = vmatprep.subr.bf16.mxu1 %v3138_v6 }
 0x380   : > { %2552 = vmatpush3.bf16.msra.mxu1 %v2693_v54 }
 0x381   : > { %2553 = vmatprep.subr.bf16.mxu1 %v3138_v6 }
 0x384   : > { %2554 = vmatpush3.bf16.msra.mxu1 %v2695_v55 }
 0x385   : > { %2555 = vmatprep.subr.bf16.mxu1 %v3138_v6 }
 0x388   : > { %2556 = vmatpush3.bf16.msra.mxu1 %v2697_v57 }
 0x38b   : > { %2558 = vmatmul.mubr.bf16.vlgmr.msra.gmra.mrb[16].mxu1 %v2766_v59 }
 0x41e   : > { %v1574_v60 = vpop.f32.mrb[8].mxu1 }
 0x41f   : > { %v2499_v61 = vpop.f32.mrb[9].mxu1 }
 0x420   : > { %v1577_v4 = vpop.f32.mrb[10].mxu1 }
 0x421   : > { %v2500_v38 = vpop.f32.mrb[11].mxu1 }
 0x43e   : > { %v1663_v62 = vpop.f32.mrb[12].mxu1 }
 0x43f   : > { %v1664_v0 = vadd.f32 %v1663_v62, %v1574_v60  ;;  %v2519_v1 = vpop.f32.mrb[13].mxu1 }
 0x440   : > { %v1666_v2 = vpop.f32.mrb[14].mxu1 }
 0x441   : > { %v1675_v5 = vadd.f32 %v2190_v63, %v1664_v0  ;;  %v1667_v33 = vadd.f32 %v1666_v2, %v1577_v4  ;;  %v2520_v41 = vpop.f32.mrb[15].mxu1 }
 0x443   : > { %vm1677_vm12 = vcmp.ge.f32.partialorder %v1675_v5, 0.0  ;;  %v1679_v6 = vmul.f32 0.1, %v1675_v5  ;;  %v1676_v8 = vadd.f32 %v2190_v63, %v1667_v33 }
 0x445   : > { %v1681_v9 = vsel %vm1677_vm12, %v1675_v5, %v1679_v6  ;;  %vm1678_vm13 = vcmp.ge.f32.partialorder %v1676_v8, 0.0  ;;  %v1680_v10 = vmul.f32 0.1, %v1676_v8 }
 0x446   : > { %1683 = vst [vmem:[#allocation3 + $0x8] sm:$0xff] %v1681_v9 }
 0x447   : > { %v1682_v11 = vsel %vm1678_vm13, %v1676_v8, %v1680_v10 }
 0x448   : > { %1684 = vst [vmem:[#allocation3 + $0x10] sm:$0xff] %v1682_v11 }
 0x44f   : > { %v1685_v12 = vld [vmem:[#allocation3 + $0x8] ss:$2 sm:$0xff] }
 0x450   : > { %v1720_v13 = vpack.c.bf16 %v1685_v12, %v1685_v12 }
 0x452   : > { %2538 = vmatmul.mubr.bf16.vlgmr.msra.gmra.mrb[20].mxu0 %v1720_v13 }
 0x45e   : > { %v1891_v14 = vpop.f32.mrb[16].mxu1 }
 0x45f   : > { %v2559_v15 = vpop.f32.mrb[17].mxu1 }
 0x460   : > { %v1894_v16 = vpop.f32.mrb[18].mxu1 }
 0x461   : > { %v2560_v17 = vpop.f32.mrb[19].mxu1 }
 0x525   : > { %v1803_v18 = vpop.f32.mrb[20].mxu0 }
 0x526   : > { %v1892_v21 = vadd.f32 %v1891_v14, %v1803_v18  ;;  %v2539_v23 = vpop.f32.mrb[21].mxu0 }
 0x527   : > { %v1806_v7 = vpop.f32.mrb[22].mxu0 }
 0x528   : > { %v1902_v3 = vadd.f32 %v2239_v20, %v1892_v21  ;;  %v2540_v24 = vpop.f32.mrb[23].mxu0 }
 0x52a   : > { %v1904_v25 = vmul.f32 0.1, %v1902_v3  ;;  %vm1903_vm14 = vcmp.ge.f32.partialorder %v1902_v3, 0.0 }
 0x52c   : > { %v1905_v26 = vsel %vm1903_vm14, %v1902_v3, %v1904_v25 }
 0x52d   : > { %1906 = vst [vmem:[%s166_s30] sm:$0xff] %v1905_v26 }
 0x52e   : > { %2713 = shalt.err (!%p2710_p3)
}
 0x52f   : > { %s2714_s17 = scalar_lea.hbm %s3314_s7, 128  ;;  %s2718_s24 = scalar_lea.hbm %s3359_s3, 256 }
 0x530   : > { %p2715_p4 = scmp.ne.s32.totalorder %s3314_s7, %s2714_s17  ;;  %p2719_p9 = scmp.lt.u32.totalorder %s3314_s7, %s3359_s3 }
 0x531   : > { %p2720_p10 = scmp.lt.u32.totalorder %s2718_s24, %s2714_s17  ;;  %p2722_p12 = scmp.lt.u32.totalorder %s2714_s17, %s3314_s7 }
 0x532   : > { %p2716_p7 = pnand %p2715_p4, %p2826_p5 }
 0x533   : > { %p2721_p11 = por %p2720_p10, %p2719_p9 }
 0x534   : > { %p2717_p8 = pneg %p2716_p7 }
 0x535   : > { %p2723_p13 = por %p2722_p12, %p2721_p11 }
 0x537   : > { %p2724_p0 = pnand %p2723_p13, %p2717_p8 }
 0x539   : > { %2727 = shalt.err (!%p2724_p0)
}
 0x53a   : > { %2591 = dma.vmem_to_hbm [thread:$0]  (%p2826_p5), %s3316_s4, 128, %s3314_s7, %s1908_s8  }
 0x53b PF: > { %p2597_p1 = scmp.ge.s32.totalorder %s2762_s15, 2  ;;  %s1933_s27 = sand.u32 1, %s2750_s12  }
 0x53c   : > { %s1934_s28 = scalar_lea.sflag [#allocation5], %s1933_s27 }
 0x53d   : > { %p2594_p2 = pnand %p2597_p1, %p2830_p6 }
 0x53f   : > { %2745 = dma.done.wait (!%p2594_p2), %s1934_s28, 128  }
 0x540   : > { %2747 = vsyncadd (!%p2594_p2), %s1934_s28, 4294967168  ;;  %p13_p3 = scmp.ge.s32.totalorder %s2813_s18, 4   ;;  %s3382_s12 = smov %s2754_s13 }
 0x541   : > { %s3383_s13 = smov %s2758_s14  ;;  %s3384_s14 = smov %s2824_s21 }
 0x542   : > { %s3385_s15 = smov %s2813_s18  ;;  %15 = sbr.rel (!%p13_p3) target bundleno = 3 (0x3), region = 128 }
 0x549   :  { %1939 = vsyncpa [#allocation5], 1 }
 0x54a   :  { %1941 = vsyncpa [#allocation5 + $0x1], 1 }

</bundles_post_ra>
